<compile_context>
chip_gen: v7x
topology: tpu7x:2x2x1
jax: 0.10.0
libtpu: 0.0.40
codegen_flags: <defaults>
</compile_context>

<pallas_src>
import math
import jax
import jax.numpy as jnp
from jax.experimental import pallas as pl
from jax.experimental.pallas import tpu as pltpu

# ----------------------- small synthetic CLIP-text config -----------------------
VOCAB      = 64          # real CLIP: 49408
CONTEXT    = 8           # real CLIP: 77
WIDTH      = 32          # real CLIP: 512
HEADS      = 4           # real CLIP: 8
HEAD_DIM   = WIDTH // HEADS
LAYERS     = 2           # real CLIP: 12
EMBED_DIM  = 32          # real CLIP: 512
N_CLASSES  = 5
SOT_TOKEN  = VOCAB - 2
EOT_TOKEN  = VOCAB - 1   # largest id -> argmax over tokens finds the EOT position
                         # (also true for real CLIP: EOT has the largest token id)


def _layernorm(x, g, b, eps=1e-5):
    # One-pass statistics: var = E[x^2] - E[x]^2 (halves the cross-lane reduce count).
    mu = jnp.mean(x, axis=-1, keepdims=True)
    ms = jnp.mean(x * x, axis=-1, keepdims=True)
    var = ms - mu * mu
    return (x - mu) * jax.lax.rsqrt(var + eps) * g + b


# ------------- Pallas kernel: fused text tower, one sequence per grid step -------------
def fused_text_kernel(eot_ref,                     # scalar-prefetch: (B,) EOT positions (SMEM)
                      x_ref,                       # (1, S, D) embedded tokens for this sequence
                      ln1g_ref, ln1b_ref, wqkv_ref, bqkv_ref, wo_ref, bo_ref,
                      ln2g_ref, ln2b_ref, w1_ref, b1_ref, w2_ref, b2_ref,
                      lnfg_ref, lnfb_ref, proj_ref,
                      out_ref,                     # (1, 1, E)
                      res_ref):                    # VMEM scratch (S, D) for the EOT row gather
    b = pl.program_id(0)
    S, D, H, Hd = CONTEXT, WIDTH, HEADS, HEAD_DIM

    x = x_ref[0].astype(jnp.float32)               # (S, D) residual stream (f32)

    # Single (S, S) causal mask shared by all heads and layers (hoisted out of the loop).
    ri = jax.lax.broadcasted_iota(jnp.int32, (S, S), 0)
    ci = jax.lax.broadcasted_iota(jnp.int32, (S, S), 1)
    causal = (ci <= ri)[None]                      # (1, S, S)
    scale = 1.0 / math.sqrt(Hd)

    for l in range(LAYERS):                        # static unroll: all layers fused
        # ---- multi-head causal self-attention (pre-LN) ----
        h = _layernorm(x, ln1g_ref[l], ln1b_ref[l])                     # (S, D)  f32
        qkv = jnp.dot(h.astype(jnp.bfloat16), wqkv_ref[l],
                      preferred_element_type=jnp.float32) + bqkv_ref[l] # (S, 3D) one fused GEMM
        q, k, v = qkv[:, :D], qkv[:, D:2 * D], qkv[:, 2 * D:]

        def heads(t):                              # (S, D) -> (H, S, Hd) via static slices
            return jnp.stack([t[:, i * Hd:(i + 1) * Hd] for i in range(H)], axis=0)
        qh, kh, vh = heads(q), heads(k), heads(v)

        s = jnp.einsum('hqe,hke->hqk', qh.astype(jnp.bfloat16), kh.astype(jnp.bfloat16),
                       preferred_element_type=jnp.float32) * scale      # (H, S, S)
        s = jnp.where(causal, s, jnp.float32(-1e30))
        p = jax.nn.softmax(s, axis=-1)                                  # f32 softmax
        o = jnp.einsum('hqk,hke->hqe', p.astype(jnp.bfloat16), vh.astype(jnp.bfloat16),
                       preferred_element_type=jnp.float32)              # (H, S, Hd)
        o2 = jnp.concatenate([o[i] for i in range(H)], axis=-1)         # (S, D) head merge
        attn = jnp.dot(o2.astype(jnp.bfloat16), wo_ref[l],
                       preferred_element_type=jnp.float32) + bo_ref[l]  # one (S,D)x(D,D) GEMM
        x = x + attn                                                    # residual in f32

        # ---- MLP with QuickGELU (pre-LN) ----
        h2 = _layernorm(x, ln2g_ref[l], ln2b_ref[l])
        h2 = jnp.dot(h2.astype(jnp.bfloat16), w1_ref[l],
                     preferred_element_type=jnp.float32) + b1_ref[l]
        h2 = h2 * jax.nn.sigmoid(1.702 * h2)                            # QuickGELU in f32
        h2 = jnp.dot(h2.astype(jnp.bfloat16), w2_ref[l],
                     preferred_element_type=jnp.float32) + b2_ref[l]
        x = x + h2

    # ---- EOT-token gather (SMEM index + pl.ds) + final LN + projection + L2 norm ----
    res_ref[...] = x
    idx = eot_ref[b]                                                    # scalar from SMEM
    x_eot = res_ref[pl.ds(idx, 1), :]                                   # (1, D) row gather
    hf = _layernorm(x_eot, lnfg_ref[...], lnfb_ref[...])
    feats = jnp.dot(hf.astype(jnp.bfloat16), proj_ref[...],
                    preferred_element_type=jnp.float32)                 # (1, E)
    inv = jax.lax.rsqrt(jnp.sum(feats * feats, axis=-1, keepdims=True) + 1e-12)
    out_ref[...] = (feats * inv).reshape(1, 1, -1).astype(out_ref.dtype)


def clip_text_pallas(x, eot_idx, packed, lnf_g, lnf_b, text_proj):
    """x: (B, S, D) embedded tokens; eot_idx: (B,) int32 EOT positions."""
    B, S, D = x.shape
    E = text_proj.shape[-1]
    weights = tuple(packed) + (lnf_g.astype(jnp.float32),
                               lnf_b.astype(jnp.float32),
                               text_proj.astype(jnp.bfloat16))

    def _const_spec(arr):
        zeros = (0,) * arr.ndim
        return pl.BlockSpec(arr.shape, lambda b, eot, _z=zeros: _z)

    in_specs = [pl.BlockSpec((1, S, D), lambda b, eot: (b, 0, 0))]       # per-sequence block
    in_specs += [_const_spec(w) for w in weights]                        # weights resident

    # Explicit scoped-VMEM budget sized from the resident footprint (review item).
    footprint = sum(int(a.size) * a.dtype.itemsize for a in (x,) + weights)
    vmem_limit = int(min(100 * 2**20, max(32 * 2**20, 6 * footprint)))

    grid_spec = pltpu.PrefetchScalarGridSpec(
        num_scalar_prefetch=1,                                           # eot_idx -> SMEM
        grid=(B,),
        in_specs=in_specs,
        out_specs=pl.BlockSpec((1, 1, E), lambda b, eot: (b, 0, 0)),
        scratch_shapes=[pltpu.VMEM((S, D), jnp.float32)],
    )
    out = pl.pallas_call(
        fused_text_kernel,
        out_shape=jax.ShapeDtypeStruct((B, 1, E), jnp.float32),
        grid_spec=grid_spec,
        compiler_params=pltpu.CompilerParams(
            dimension_semantics=("parallel",),                           # 2-TC sharding on v7x
            vmem_limit_bytes=vmem_limit,
        ),
    )(eot_idx, x, *weights)
    return out.reshape(B, E)


# ------------------------------ parameter construction ------------------------------
def init_params(key):
    keys = jax.random.split(key, 4 + LAYERS)
    token_emb = 0.02 * jax.random.normal(keys[0], (VOCAB, WIDTH), jnp.float32)
    pos_emb = 0.01 * jax.random.normal(keys[1], (CONTEXT, WIDTH), jnp.float32)
    text_proj = (WIDTH ** -0.5) * jax.random.normal(keys[2], (WIDTH, EMBED_DIM), jnp.float32)
    lnf_g = jnp.ones((1, WIDTH), jnp.float32)
    lnf_b = jnp.zeros((1, WIDTH), jnp.float32)

    blocks = []
    for l in range(LAYERS):
        bk = jax.random.split(keys[4 + l], 4)
        std = WIDTH ** -0.5
        blocks.append((
            jnp.ones((1, WIDTH), jnp.float32),                               # ln1 gamma
            jnp.zeros((1, WIDTH), jnp.float32),                              # ln1 beta
            std * jax.random.normal(bk[0], (WIDTH, 3 * WIDTH), jnp.float32), # W_qkv (fused)
            jnp.zeros((1, 3 * WIDTH), jnp.float32),                          # b_qkv
            std * jax.random.normal(bk[1], (WIDTH, WIDTH), jnp.float32),     # W_o
            jnp.zeros((1, WIDTH), jnp.float32),                              # b_o
            jnp.ones((1, WIDTH), jnp.float32),                               # ln2 gamma
            jnp.zeros((1, WIDTH), jnp.float32),                              # ln2 beta
            std * jax.random.normal(bk[2], (WIDTH, 4 * WIDTH), jnp.float32), # W_fc
            jnp.zeros((1, 4 * WIDTH), jnp.float32),                          # b_fc
            (2 * WIDTH) ** -0.5 * jax.random.normal(bk[3], (4 * WIDTH, WIDTH), jnp.float32),
            jnp.zeros((1, WIDTH), jnp.float32),                              # b_proj
        ))
    return token_emb, pos_emb, text_proj, lnf_g, lnf_b, blocks


def pack_blocks(blocks):
    """Stack the frozen per-layer weights across layers (plain JAX, once).
    Matmul weights are cast to bf16 for the MXU; biases / LN params stay f32."""
    names = ("ln1g", "ln1b", "wqkv", "bqkv", "wo", "bo",
             "ln2g", "ln2b", "w1", "b1", "w2", "b2")
    cols = {n: [] for n in names}
    for blk in blocks:
        for n, a in zip(names, blk):
            cols[n].append(a)
    packed = []
    for n in names:
        stacked = jnp.stack(cols[n], axis=0)
        if n in ("wqkv", "wo", "w1", "w2"):
            stacked = stacked.astype(jnp.bfloat16)
        packed.append(stacked)
    return tuple(packed)


def make_token_table(key):
    # Deterministic stand-in for clip.tokenize(f"a photo of a {c}.") per class.
    n_text = 4
    body = jax.random.randint(key, (N_CLASSES, n_text), 1, SOT_TOKEN).astype(jnp.int32)
    tbl = jnp.zeros((N_CLASSES, CONTEXT), jnp.int32)
    tbl = tbl.at[:, 0].set(SOT_TOKEN)
    tbl = tbl.at[:, 1:1 + n_text].set(body)
    tbl = tbl.at[:, 1 + n_text].set(EOT_TOKEN)
    return tbl


# ----------------------------- pure-JAX reference (f32, standard layout) -----------------------------
def ref_forward(x, blocks, lnf_g, lnf_b, text_proj, eot_idx):
    B, S, D = x.shape
    causal = jnp.tril(jnp.ones((S, S), bool))
    for (ln1g, ln1b, wqkv, bqkv, wo, bo, ln2g, ln2b, w1, b1, w2, b2) in blocks:
        h = _layernorm(x, ln1g, ln1b)
        qkv = h @ wqkv + bqkv
        q, k, v = jnp.split(qkv, 3, axis=-1)
        split = lambda t: t.reshape(B, S, HEADS, HEAD_DIM).transpose(0, 2, 1, 3)
        qh, kh, vh = split(q), split(k), split(v)
        s = jnp.einsum('bhse,bhte->bhst', qh, kh) / math.sqrt(HEAD_DIM)
        s = jnp.where(causal, s, -1e30)
        p = jax.nn.softmax(s, axis=-1)
        o = jnp.einsum('bhst,bhte->bhse', p, vh).transpose(0, 2, 1, 3).reshape(B, S, D)
        x = x + o @ wo + bo
        h2 = _layernorm(x, ln2g, ln2b)
        h2 = h2 @ w1 + b1
        h2 = h2 * jax.nn.sigmoid(1.702 * h2)
        x = x + h2 @ w2 + b2
    x_eot = x[jnp.arange(B), eot_idx]
    hf = _layernorm(x_eot, lnf_g, lnf_b)
    feats = hf @ text_proj
    return feats / jnp.linalg.norm(feats, axis=-1, keepdims=True)


# --------------------------------- forward (the model) ---------------------------------
def clip_text_forward(batch_label, token_table, token_emb, pos_emb,
                      packed, lnf_g, lnf_b, text_proj):
    tok = token_table[batch_label]                       # (B, S)   -- "tokenize"
    x = token_emb[tok] + pos_emb[None, :, :]             # (B, S, D) glue: embedding gather
    eot_idx = jnp.argmax(tok, axis=-1).astype(jnp.int32) # EOT token = largest id
    feats = clip_text_pallas(x, eot_idx, packed, lnf_g, lnf_b, text_proj)
    return feats, x, eot_idx


if __name__ == "__main__":
    key = jax.random.PRNGKey(0)
    k_params, k_tok = jax.random.split(key)
    token_emb, pos_emb, text_proj, lnf_g, lnf_b, blocks = init_params(k_params)
    token_table = make_token_table(k_tok)
    packed = pack_blocks(blocks)

    batch_label = jnp.array([0, 3], dtype=jnp.int32)     # batch of 2 class labels

    feats, x_emb, eot_idx = clip_text_forward(batch_label, token_table, token_emb,
                                              pos_emb, packed, lnf_g, lnf_b, text_proj)
    feats = jax.block_until_ready(feats)

    ref = ref_forward(x_emb, blocks, lnf_g, lnf_b, text_proj, eot_idx)

    assert feats.shape == (2, EMBED_DIM)
    assert bool(jnp.all(jnp.isfinite(feats)))
    norms = jnp.linalg.norm(feats, axis=-1)
    assert bool(jnp.all(jnp.abs(norms - 1.0) < 1e-4))
    # Kernel uses bf16 weights / MXU operands -> looser tolerance vs. f32 reference.
    cos = jnp.sum(feats * ref, axis=-1)
    assert bool(jnp.all(cos > 0.995)), cos
    assert bool(jnp.max(jnp.abs(feats - ref)) < 0.06)
    print("KERNEL_OK")
</pallas_src>

<mosaic_0001>
module attributes {stable_mosaic.version = 11 : i64} {
  func.func @fused_text_kernel(%arg0: i32, %arg1: memref<2xi32, #tpu.memory_space<smem>>, %arg2: memref<1x8x32xf32, #tpu.memory_space<vmem>>, %arg3: memref<2x1x32xf32, #tpu.memory_space<vmem>>, %arg4: memref<2x1x32xf32, #tpu.memory_space<vmem>>, %arg5: memref<2x32x96xbf16, #tpu.memory_space<vmem>>, %arg6: memref<2x1x96xf32, #tpu.memory_space<vmem>>, %arg7: memref<2x32x32xbf16, #tpu.memory_space<vmem>>, %arg8: memref<2x1x32xf32, #tpu.memory_space<vmem>>, %arg9: memref<2x1x32xf32, #tpu.memory_space<vmem>>, %arg10: memref<2x1x32xf32, #tpu.memory_space<vmem>>, %arg11: memref<2x32x128xbf16, #tpu.memory_space<vmem>>, %arg12: memref<2x1x128xf32, #tpu.memory_space<vmem>>, %arg13: memref<2x128x32xbf16, #tpu.memory_space<vmem>>, %arg14: memref<2x1x32xf32, #tpu.memory_space<vmem>>, %arg15: memref<1x32xf32, #tpu.memory_space<vmem>>, %arg16: memref<1x32xf32, #tpu.memory_space<vmem>>, %arg17: memref<32x32xbf16, #tpu.memory_space<vmem>>, %arg18: memref<1x1x32xf32, #tpu.memory_space<vmem>>, %arg19: memref<8x32xf32, #tpu.memory_space<vmem>>) attributes {dimension_semantics = [#tpu.dimension_semantics<parallel>], iteration_bounds = array<i64: 2>, scalar_prefetch = 1 : i64, scratch_operands = 1 : i64, tpu.core_type = #tpu.core_type<tc>, window_params = [{transform_indices = @transform_0, window_bounds = array<i64: 1, 8, 32>}, {pipeline_mode = #tpu.pipeline_mode<synchronous>, transform_indices = @transform_1, window_bounds = array<i64: 2, 1, 32>}, {pipeline_mode = #tpu.pipeline_mode<synchronous>, transform_indices = @transform_2, window_bounds = array<i64: 2, 1, 32>}, {pipeline_mode = #tpu.pipeline_mode<synchronous>, transform_indices = @transform_3, window_bounds = array<i64: 2, 32, 96>}, {pipeline_mode = #tpu.pipeline_mode<synchronous>, transform_indices = @transform_4, window_bounds = array<i64: 2, 1, 96>}, {pipeline_mode = #tpu.pipeline_mode<synchronous>, transform_indices = @transform_5, window_bounds = array<i64: 2, 32, 32>}, {pipeline_mode = #tpu.pipeline_mode<synchronous>, transform_indices = @transform_6, window_bounds = array<i64: 2, 1, 32>}, {pipeline_mode = #tpu.pipeline_mode<synchronous>, transform_indices = @transform_7, window_bounds = array<i64: 2, 1, 32>}, {pipeline_mode = #tpu.pipeline_mode<synchronous>, transform_indices = @transform_8, window_bounds = array<i64: 2, 1, 32>}, {pipeline_mode = #tpu.pipeline_mode<synchronous>, transform_indices = @transform_9, window_bounds = array<i64: 2, 32, 128>}, {pipeline_mode = #tpu.pipeline_mode<synchronous>, transform_indices = @transform_10, window_bounds = array<i64: 2, 1, 128>}, {pipeline_mode = #tpu.pipeline_mode<synchronous>, transform_indices = @transform_11, window_bounds = array<i64: 2, 128, 32>}, {pipeline_mode = #tpu.pipeline_mode<synchronous>, transform_indices = @transform_12, window_bounds = array<i64: 2, 1, 32>}, {pipeline_mode = #tpu.pipeline_mode<synchronous>, transform_indices = @transform_13, window_bounds = array<i64: 1, 32>}, {pipeline_mode = #tpu.pipeline_mode<synchronous>, transform_indices = @transform_14, window_bounds = array<i64: 1, 32>}, {pipeline_mode = #tpu.pipeline_mode<synchronous>, transform_indices = @transform_15, window_bounds = array<i64: 32, 32>}, {transform_indices = @transform_16, window_bounds = array<i64: 1, 1, 32>}]} {
    %c0 = arith.constant 0 : index
    %c0_0 = arith.constant 0 : index
    %c0_1 = arith.constant 0 : index
    %0 = vector.load %arg2[%c0, %c0_0, %c0_1] : memref<1x8x32xf32, #tpu.memory_space<vmem>>, vector<1x8x32xf32>
    %1 = vector.shape_cast %0 : vector<1x8x32xf32> to vector<8x32xf32>
    %2 = tpu.iota {dimensions = array<i32: 0>} : vector<8x8xi32>
    %3 = tpu.iota {dimensions = array<i32: 1>} : vector<8x8xi32>
    %4 = arith.cmpi sle, %3, %2 : vector<8x8xi32>
    %5 = vector.shape_cast %4 : vector<8x8xi1> to vector<1x8x8xi1>
    %c0_2 = arith.constant 0 : index
    %c0_3 = arith.constant 0 : index
    %c0_4 = arith.constant 0 : index
    %6 = vector.load %arg3[%c0_2, %c0_3, %c0_4] : memref<2x1x32xf32, #tpu.memory_space<vmem>>, vector<1x1x32xf32>
    %7 = vector.shape_cast %6 : vector<1x1x32xf32> to vector<1x32xf32>
    %c0_5 = arith.constant 0 : index
    %c0_6 = arith.constant 0 : index
    %c0_7 = arith.constant 0 : index
    %8 = vector.load %arg4[%c0_5, %c0_6, %c0_7] : memref<2x1x32xf32, #tpu.memory_space<vmem>>, vector<1x1x32xf32>
    %9 = vector.shape_cast %8 : vector<1x1x32xf32> to vector<1x32xf32>
    %cst = arith.constant dense<0.000000e+00> : vector<8xf32>
    %10 = vector.multi_reduction <add>, %1, %cst [1] : vector<8x32xf32> to vector<8xf32>
    %11 = vector.shape_cast %10 : vector<8xf32> to vector<8x1xf32>
    %cst_8 = arith.constant 3.200000e+01 : f32
    %12 = vector.broadcast %cst_8 : f32 to vector<8x1xf32>
    %13 = arith.divf %11, %12 : vector<8x1xf32>
    %14 = arith.mulf %1, %1 : vector<8x32xf32>
    %cst_9 = arith.constant dense<0.000000e+00> : vector<8xf32>
    %15 = vector.multi_reduction <add>, %14, %cst_9 [1] : vector<8x32xf32> to vector<8xf32>
    %16 = vector.shape_cast %15 : vector<8xf32> to vector<8x1xf32>
    %cst_10 = arith.constant 3.200000e+01 : f32
    %17 = vector.broadcast %cst_10 : f32 to vector<8x1xf32>
    %18 = arith.divf %16, %17 : vector<8x1xf32>
    %19 = arith.mulf %13, %13 : vector<8x1xf32>
    %20 = arith.subf %18, %19 : vector<8x1xf32>
    %21 = vector.broadcast %13 : vector<8x1xf32> to vector<8x32xf32>
    %22 = arith.subf %1, %21 : vector<8x32xf32>
    %cst_11 = arith.constant 9.99999974E-6 : f32
    %23 = vector.broadcast %cst_11 : f32 to vector<8x1xf32>
    %24 = arith.addf %20, %23 : vector<8x1xf32>
    %25 = math.rsqrt %24 : vector<8x1xf32>
    %26 = vector.broadcast %25 : vector<8x1xf32> to vector<8x32xf32>
    %27 = arith.mulf %22, %26 : vector<8x32xf32>
    %28 = vector.broadcast %7 : vector<1x32xf32> to vector<8x32xf32>
    %29 = arith.mulf %27, %28 : vector<8x32xf32>
    %30 = vector.broadcast %9 : vector<1x32xf32> to vector<8x32xf32>
    %31 = arith.addf %29, %30 : vector<8x32xf32>
    %32 = arith.truncf %31 : vector<8x32xf32> to vector<8x32xbf16>
    %c0_12 = arith.constant 0 : index
    %c0_13 = arith.constant 0 : index
    %c0_14 = arith.constant 0 : index
    %33 = vector.load %arg5[%c0_12, %c0_13, %c0_14] : memref<2x32x96xbf16, #tpu.memory_space<vmem>>, vector<1x32x96xbf16>
    %34 = vector.shape_cast %33 : vector<1x32x96xbf16> to vector<32x96xbf16>
    %cst_15 = arith.constant dense<0.000000e+00> : vector<8x96xf32>
    %35 = tpu.matmul %32, %34, %cst_15 {dimension_numbers = #tpu.dot_dimension_numbers<[1], [0], [0], [1], [0, 0, 1, 1], [], []>} : vector<8x32xbf16>, vector<32x96xbf16>, vector<8x96xf32> -> vector<8x96xf32>
    %c0_16 = arith.constant 0 : index
    %c0_17 = arith.constant 0 : index
    %c0_18 = arith.constant 0 : index
    %36 = vector.load %arg6[%c0_16, %c0_17, %c0_18] : memref<2x1x96xf32, #tpu.memory_space<vmem>>, vector<1x1x96xf32>
    %37 = vector.shape_cast %36 : vector<1x1x96xf32> to vector<1x96xf32>
    %38 = vector.broadcast %37 : vector<1x96xf32> to vector<8x96xf32>
    %39 = arith.addf %35, %38 : vector<8x96xf32>
    %40 = vector.extract_strided_slice %39 {offsets = [0, 0], sizes = [8, 32], strides = [1, 1]} : vector<8x96xf32> to vector<8x32xf32>
    %41 = vector.extract_strided_slice %39 {offsets = [0, 32], sizes = [8, 32], strides = [1, 1]} : vector<8x96xf32> to vector<8x32xf32>
    %42 = vector.extract_strided_slice %39 {offsets = [0, 64], sizes = [8, 32], strides = [1, 1]} : vector<8x96xf32> to vector<8x32xf32>
    %43 = vector.extract_strided_slice %40 {offsets = [0, 0], sizes = [8, 8], strides = [1, 1]} : vector<8x32xf32> to vector<8x8xf32>
    %44 = vector.extract_strided_slice %40 {offsets = [0, 8], sizes = [8, 8], strides = [1, 1]} : vector<8x32xf32> to vector<8x8xf32>
    %45 = vector.extract_strided_slice %40 {offsets = [0, 16], sizes = [8, 8], strides = [1, 1]} : vector<8x32xf32> to vector<8x8xf32>
    %46 = vector.extract_strided_slice %40 {offsets = [0, 24], sizes = [8, 8], strides = [1, 1]} : vector<8x32xf32> to vector<8x8xf32>
    %47 = vector.shape_cast %43 : vector<8x8xf32> to vector<1x8x8xf32>
    %48 = vector.shape_cast %44 : vector<8x8xf32> to vector<1x8x8xf32>
    %49 = vector.shape_cast %45 : vector<8x8xf32> to vector<1x8x8xf32>
    %50 = vector.shape_cast %46 : vector<8x8xf32> to vector<1x8x8xf32>
    %51 = tpu.concatenate %47, %48, %49, %50 in 0 : vector<1x8x8xf32>, vector<1x8x8xf32>, vector<1x8x8xf32>, vector<1x8x8xf32> -> vector<4x8x8xf32>
    %52 = vector.extract_strided_slice %41 {offsets = [0, 0], sizes = [8, 8], strides = [1, 1]} : vector<8x32xf32> to vector<8x8xf32>
    %53 = vector.extract_strided_slice %41 {offsets = [0, 8], sizes = [8, 8], strides = [1, 1]} : vector<8x32xf32> to vector<8x8xf32>
    %54 = vector.extract_strided_slice %41 {offsets = [0, 16], sizes = [8, 8], strides = [1, 1]} : vector<8x32xf32> to vector<8x8xf32>
    %55 = vector.extract_strided_slice %41 {offsets = [0, 24], sizes = [8, 8], strides = [1, 1]} : vector<8x32xf32> to vector<8x8xf32>
    %56 = vector.shape_cast %52 : vector<8x8xf32> to vector<1x8x8xf32>
    %57 = vector.shape_cast %53 : vector<8x8xf32> to vector<1x8x8xf32>
    %58 = vector.shape_cast %54 : vector<8x8xf32> to vector<1x8x8xf32>
    %59 = vector.shape_cast %55 : vector<8x8xf32> to vector<1x8x8xf32>
    %60 = tpu.concatenate %56, %57, %58, %59 in 0 : vector<1x8x8xf32>, vector<1x8x8xf32>, vector<1x8x8xf32>, vector<1x8x8xf32> -> vector<4x8x8xf32>
    %61 = vector.extract_strided_slice %42 {offsets = [0, 0], sizes = [8, 8], strides = [1, 1]} : vector<8x32xf32> to vector<8x8xf32>
    %62 = vector.extract_strided_slice %42 {offsets = [0, 8], sizes = [8, 8], strides = [1, 1]} : vector<8x32xf32> to vector<8x8xf32>
    %63 = vector.extract_strided_slice %42 {offsets = [0, 16], sizes = [8, 8], strides = [1, 1]} : vector<8x32xf32> to vector<8x8xf32>
    %64 = vector.extract_strided_slice %42 {offsets = [0, 24], sizes = [8, 8], strides = [1, 1]} : vector<8x32xf32> to vector<8x8xf32>
    %65 = vector.shape_cast %61 : vector<8x8xf32> to vector<1x8x8xf32>
    %66 = vector.shape_cast %62 : vector<8x8xf32> to vector<1x8x8xf32>
    %67 = vector.shape_cast %63 : vector<8x8xf32> to vector<1x8x8xf32>
    %68 = vector.shape_cast %64 : vector<8x8xf32> to vector<1x8x8xf32>
    %69 = tpu.concatenate %65, %66, %67, %68 in 0 : vector<1x8x8xf32>, vector<1x8x8xf32>, vector<1x8x8xf32>, vector<1x8x8xf32> -> vector<4x8x8xf32>
    %70 = arith.truncf %51 : vector<4x8x8xf32> to vector<4x8x8xbf16>
    %71 = arith.truncf %60 : vector<4x8x8xf32> to vector<4x8x8xbf16>
    "tpu.trace_start"() <{level = 10 : i32, message = "hqe,hke->hqk"}> : () -> ()
    %cst_19 = arith.constant dense<0.000000e+00> : vector<4x8x8xf32>
    %72 = tpu.matmul %70, %71, %cst_19 {dimension_numbers = #tpu.dot_dimension_numbers<[2], [2], [1], [1], [0, 0, 0, 1, 1, 1], [0], [0]>} : vector<4x8x8xbf16>, vector<4x8x8xbf16>, vector<4x8x8xf32> -> vector<4x8x8xf32>
    "tpu.trace_stop"() : () -> ()
    %cst_20 = arith.constant 0.353553385 : f32
    %73 = vector.broadcast %cst_20 : f32 to vector<4x8x8xf32>
    %74 = arith.mulf %72, %73 : vector<4x8x8xf32>
    %cst_21 = arith.constant -1.000000e+30 : f32
    %75 = vector.shape_cast %5 : vector<1x8x8xi1> to vector<1x8x8xi1>
    %76 = vector.broadcast %75 : vector<1x8x8xi1> to vector<4x8x8xi1>
    %77 = vector.broadcast %cst_21 : f32 to vector<4x8x8xf32>
    %78 = arith.select %76, %74, %77 : vector<4x8x8xi1>, vector<4x8x8xf32>
    %cst_22 = arith.constant dense<0xFF800000> : vector<4x8xf32>
    %79 = vector.multi_reduction <maximumf>, %78, %cst_22 [2] : vector<4x8x8xf32> to vector<4x8xf32>
    %cst_23 = arith.constant 0xFF800000 : f32
    %80 = vector.broadcast %cst_23 : f32 to vector<4x8xf32>
    %81 = arith.maximumf %80, %79 : vector<4x8xf32>
    %82 = vector.shape_cast %81 : vector<4x8xf32> to vector<4x8x1xf32>
    %83 = vector.broadcast %82 : vector<4x8x1xf32> to vector<4x8x8xf32>
    %84 = arith.subf %78, %83 : vector<4x8x8xf32>
    %85 = math.exp %84 : vector<4x8x8xf32>
    %cst_24 = arith.constant dense<0.000000e+00> : vector<4x8xf32>
    %86 = vector.multi_reduction <add>, %85, %cst_24 [2] : vector<4x8x8xf32> to vector<4x8xf32>
    %87 = vector.shape_cast %86 : vector<4x8xf32> to vector<4x8x1xf32>
    %88 = vector.broadcast %87 : vector<4x8x1xf32> to vector<4x8x8xf32>
    %89 = arith.divf %85, %88 : vector<4x8x8xf32>
    %90 = arith.truncf %89 : vector<4x8x8xf32> to vector<4x8x8xbf16>
    %91 = arith.truncf %69 : vector<4x8x8xf32> to vector<4x8x8xbf16>
    "tpu.trace_start"() <{level = 10 : i32, message = "hqk,hke->hqe"}> : () -> ()
    %cst_25 = arith.constant dense<0.000000e+00> : vector<4x8x8xf32>
    %92 = tpu.matmul %90, %91, %cst_25 {dimension_numbers = #tpu.dot_dimension_numbers<[2], [1], [1], [2], [0, 0, 0, 1, 1, 2], [0], [0]>} : vector<4x8x8xbf16>, vector<4x8x8xbf16>, vector<4x8x8xf32> -> vector<4x8x8xf32>
    "tpu.trace_stop"() : () -> ()
    %93 = vector.extract_strided_slice %92 {offsets = [0, 0, 0], sizes = [1, 8, 8], strides = [1, 1, 1]} : vector<4x8x8xf32> to vector<1x8x8xf32>
    %94 = vector.shape_cast %93 : vector<1x8x8xf32> to vector<8x8xf32>
    %95 = vector.extract_strided_slice %92 {offsets = [1, 0, 0], sizes = [1, 8, 8], strides = [1, 1, 1]} : vector<4x8x8xf32> to vector<1x8x8xf32>
    %96 = vector.shape_cast %95 : vector<1x8x8xf32> to vector<8x8xf32>
    %97 = vector.extract_strided_slice %92 {offsets = [2, 0, 0], sizes = [1, 8, 8], strides = [1, 1, 1]} : vector<4x8x8xf32> to vector<1x8x8xf32>
    %98 = vector.shape_cast %97 : vector<1x8x8xf32> to vector<8x8xf32>
    %99 = vector.extract_strided_slice %92 {offsets = [3, 0, 0], sizes = [1, 8, 8], strides = [1, 1, 1]} : vector<4x8x8xf32> to vector<1x8x8xf32>
    %100 = vector.shape_cast %99 : vector<1x8x8xf32> to vector<8x8xf32>
    %101 = tpu.concatenate %94, %96, %98, %100 in 1 : vector<8x8xf32>, vector<8x8xf32>, vector<8x8xf32>, vector<8x8xf32> -> vector<8x32xf32>
    %102 = arith.truncf %101 : vector<8x32xf32> to vector<8x32xbf16>
    %c0_26 = arith.constant 0 : index
    %c0_27 = arith.constant 0 : index
    %c0_28 = arith.constant 0 : index
    %103 = vector.load %arg7[%c0_26, %c0_27, %c0_28] : memref<2x32x32xbf16, #tpu.memory_space<vmem>>, vector<1x32x32xbf16>
    %104 = vector.shape_cast %103 : vector<1x32x32xbf16> to vector<32x32xbf16>
    %cst_29 = arith.constant dense<0.000000e+00> : vector<8x32xf32>
    %105 = tpu.matmul %102, %104, %cst_29 {dimension_numbers = #tpu.dot_dimension_numbers<[1], [0], [0], [1], [0, 0, 1, 1], [], []>} : vector<8x32xbf16>, vector<32x32xbf16>, vector<8x32xf32> -> vector<8x32xf32>
    %c0_30 = arith.constant 0 : index
    %c0_31 = arith.constant 0 : index
    %c0_32 = arith.constant 0 : index
    %106 = vector.load %arg8[%c0_30, %c0_31, %c0_32] : memref<2x1x32xf32, #tpu.memory_space<vmem>>, vector<1x1x32xf32>
    %107 = vector.shape_cast %106 : vector<1x1x32xf32> to vector<1x32xf32>
    %108 = vector.broadcast %107 : vector<1x32xf32> to vector<8x32xf32>
    %109 = arith.addf %105, %108 : vector<8x32xf32>
    %110 = arith.addf %1, %109 : vector<8x32xf32>
    %c0_33 = arith.constant 0 : index
    %c0_34 = arith.constant 0 : index
    %c0_35 = arith.constant 0 : index
    %111 = vector.load %arg9[%c0_33, %c0_34, %c0_35] : memref<2x1x32xf32, #tpu.memory_space<vmem>>, vector<1x1x32xf32>
    %112 = vector.shape_cast %111 : vector<1x1x32xf32> to vector<1x32xf32>
    %c0_36 = arith.constant 0 : index
    %c0_37 = arith.constant 0 : index
    %c0_38 = arith.constant 0 : index
    %113 = vector.load %arg10[%c0_36, %c0_37, %c0_38] : memref<2x1x32xf32, #tpu.memory_space<vmem>>, vector<1x1x32xf32>
    %114 = vector.shape_cast %113 : vector<1x1x32xf32> to vector<1x32xf32>
    %cst_39 = arith.constant dense<0.000000e+00> : vector<8xf32>
    %115 = vector.multi_reduction <add>, %110, %cst_39 [1] : vector<8x32xf32> to vector<8xf32>
    %116 = vector.shape_cast %115 : vector<8xf32> to vector<8x1xf32>
    %cst_40 = arith.constant 3.200000e+01 : f32
    %117 = vector.broadcast %cst_40 : f32 to vector<8x1xf32>
    %118 = arith.divf %116, %117 : vector<8x1xf32>
    %119 = arith.mulf %110, %110 : vector<8x32xf32>
    %cst_41 = arith.constant dense<0.000000e+00> : vector<8xf32>
    %120 = vector.multi_reduction <add>, %119, %cst_41 [1] : vector<8x32xf32> to vector<8xf32>
    %121 = vector.shape_cast %120 : vector<8xf32> to vector<8x1xf32>
    %cst_42 = arith.constant 3.200000e+01 : f32
    %122 = vector.broadcast %cst_42 : f32 to vector<8x1xf32>
    %123 = arith.divf %121, %122 : vector<8x1xf32>
    %124 = arith.mulf %118, %118 : vector<8x1xf32>
    %125 = arith.subf %123, %124 : vector<8x1xf32>
    %126 = vector.broadcast %118 : vector<8x1xf32> to vector<8x32xf32>
    %127 = arith.subf %110, %126 : vector<8x32xf32>
    %cst_43 = arith.constant 9.99999974E-6 : f32
    %128 = vector.broadcast %cst_43 : f32 to vector<8x1xf32>
    %129 = arith.addf %125, %128 : vector<8x1xf32>
    %130 = math.rsqrt %129 : vector<8x1xf32>
    %131 = vector.broadcast %130 : vector<8x1xf32> to vector<8x32xf32>
    %132 = arith.mulf %127, %131 : vector<8x32xf32>
    %133 = vector.broadcast %112 : vector<1x32xf32> to vector<8x32xf32>
    %134 = arith.mulf %132, %133 : vector<8x32xf32>
    %135 = vector.broadcast %114 : vector<1x32xf32> to vector<8x32xf32>
    %136 = arith.addf %134, %135 : vector<8x32xf32>
    %137 = arith.truncf %136 : vector<8x32xf32> to vector<8x32xbf16>
    %c0_44 = arith.constant 0 : index
    %c0_45 = arith.constant 0 : index
    %c0_46 = arith.constant 0 : index
    %138 = vector.load %arg11[%c0_44, %c0_45, %c0_46] : memref<2x32x128xbf16, #tpu.memory_space<vmem>>, vector<1x32x128xbf16>
    %139 = vector.shape_cast %138 : vector<1x32x128xbf16> to vector<32x128xbf16>
    %cst_47 = arith.constant dense<0.000000e+00> : vector<8x128xf32>
    %140 = tpu.matmul %137, %139, %cst_47 {dimension_numbers = #tpu.dot_dimension_numbers<[1], [0], [0], [1], [0, 0, 1, 1], [], []>} : vector<8x32xbf16>, vector<32x128xbf16>, vector<8x128xf32> -> vector<8x128xf32>
    %c0_48 = arith.constant 0 : index
    %c0_49 = arith.constant 0 : index
    %c0_50 = arith.constant 0 : index
    %141 = vector.load %arg12[%c0_48, %c0_49, %c0_50] : memref<2x1x128xf32, #tpu.memory_space<vmem>>, vector<1x1x128xf32>
    %142 = vector.shape_cast %141 : vector<1x1x128xf32> to vector<1x128xf32>
    %143 = vector.broadcast %142 : vector<1x128xf32> to vector<8x128xf32>
    %144 = arith.addf %140, %143 : vector<8x128xf32>
    %cst_51 = arith.constant 1.702000e+00 : f32
    %145 = vector.broadcast %cst_51 : f32 to vector<8x128xf32>
    %146 = arith.mulf %145, %144 : vector<8x128xf32>
    %147 = arith.negf %146 : vector<8x128xf32>
    %148 = math.exp %147 : vector<8x128xf32>
    %cst_52 = arith.constant 1.000000e+00 : f32
    %149 = vector.broadcast %cst_52 : f32 to vector<8x128xf32>
    %150 = arith.addf %149, %148 : vector<8x128xf32>
    %151 = arith.divf %149, %150 : vector<8x128xf32>
    %152 = arith.mulf %144, %151 : vector<8x128xf32>
    %153 = arith.truncf %152 : vector<8x128xf32> to vector<8x128xbf16>
    %c0_53 = arith.constant 0 : index
    %c0_54 = arith.constant 0 : index
    %c0_55 = arith.constant 0 : index
    %154 = vector.load %arg13[%c0_53, %c0_54, %c0_55] : memref<2x128x32xbf16, #tpu.memory_space<vmem>>, vector<1x128x32xbf16>
    %155 = vector.shape_cast %154 : vector<1x128x32xbf16> to vector<128x32xbf16>
    %cst_56 = arith.constant dense<0.000000e+00> : vector<8x32xf32>
    %156 = tpu.matmul %153, %155, %cst_56 {dimension_numbers = #tpu.dot_dimension_numbers<[1], [0], [0], [1], [0, 0, 1, 1], [], []>} : vector<8x128xbf16>, vector<128x32xbf16>, vector<8x32xf32> -> vector<8x32xf32>
    %c0_57 = arith.constant 0 : index
    %c0_58 = arith.constant 0 : index
    %c0_59 = arith.constant 0 : index
    %157 = vector.load %arg14[%c0_57, %c0_58, %c0_59] : memref<2x1x32xf32, #tpu.memory_space<vmem>>, vector<1x1x32xf32>
    %158 = vector.shape_cast %157 : vector<1x1x32xf32> to vector<1x32xf32>
    %159 = vector.broadcast %158 : vector<1x32xf32> to vector<8x32xf32>
    %160 = arith.addf %156, %159 : vector<8x32xf32>
    %161 = arith.addf %110, %160 : vector<8x32xf32>
    %c1 = arith.constant 1 : index
    %c0_60 = arith.constant 0 : index
    %c0_61 = arith.constant 0 : index
    %162 = vector.load %arg3[%c1, %c0_60, %c0_61] : memref<2x1x32xf32, #tpu.memory_space<vmem>>, vector<1x1x32xf32>
    %163 = vector.shape_cast %162 : vector<1x1x32xf32> to vector<1x32xf32>
    %c1_62 = arith.constant 1 : index
    %c0_63 = arith.constant 0 : index
    %c0_64 = arith.constant 0 : index
    %164 = vector.load %arg4[%c1_62, %c0_63, %c0_64] : memref<2x1x32xf32, #tpu.memory_space<vmem>>, vector<1x1x32xf32>
    %165 = vector.shape_cast %164 : vector<1x1x32xf32> to vector<1x32xf32>
    %cst_65 = arith.constant dense<0.000000e+00> : vector<8xf32>
    %166 = vector.multi_reduction <add>, %161, %cst_65 [1] : vector<8x32xf32> to vector<8xf32>
    %167 = vector.shape_cast %166 : vector<8xf32> to vector<8x1xf32>
    %cst_66 = arith.constant 3.200000e+01 : f32
    %168 = vector.broadcast %cst_66 : f32 to vector<8x1xf32>
    %169 = arith.divf %167, %168 : vector<8x1xf32>
    %170 = arith.mulf %161, %161 : vector<8x32xf32>
    %cst_67 = arith.constant dense<0.000000e+00> : vector<8xf32>
    %171 = vector.multi_reduction <add>, %170, %cst_67 [1] : vector<8x32xf32> to vector<8xf32>
    %172 = vector.shape_cast %171 : vector<8xf32> to vector<8x1xf32>
    %cst_68 = arith.constant 3.200000e+01 : f32
    %173 = vector.broadcast %cst_68 : f32 to vector<8x1xf32>
    %174 = arith.divf %172, %173 : vector<8x1xf32>
    %175 = arith.mulf %169, %169 : vector<8x1xf32>
    %176 = arith.subf %174, %175 : vector<8x1xf32>
    %177 = vector.broadcast %169 : vector<8x1xf32> to vector<8x32xf32>
    %178 = arith.subf %161, %177 : vector<8x32xf32>
    %cst_69 = arith.constant 9.99999974E-6 : f32
    %179 = vector.broadcast %cst_69 : f32 to vector<8x1xf32>
    %180 = arith.addf %176, %179 : vector<8x1xf32>
    %181 = math.rsqrt %180 : vector<8x1xf32>
    %182 = vector.broadcast %181 : vector<8x1xf32> to vector<8x32xf32>
    %183 = arith.mulf %178, %182 : vector<8x32xf32>
    %184 = vector.broadcast %163 : vector<1x32xf32> to vector<8x32xf32>
    %185 = arith.mulf %183, %184 : vector<8x32xf32>
    %186 = vector.broadcast %165 : vector<1x32xf32> to vector<8x32xf32>
    %187 = arith.addf %185, %186 : vector<8x32xf32>
    %188 = arith.truncf %187 : vector<8x32xf32> to vector<8x32xbf16>
    %c1_70 = arith.constant 1 : index
    %c0_71 = arith.constant 0 : index
    %c0_72 = arith.constant 0 : index
    %189 = vector.load %arg5[%c1_70, %c0_71, %c0_72] : memref<2x32x96xbf16, #tpu.memory_space<vmem>>, vector<1x32x96xbf16>
    %190 = vector.shape_cast %189 : vector<1x32x96xbf16> to vector<32x96xbf16>
    %cst_73 = arith.constant dense<0.000000e+00> : vector<8x96xf32>
    %191 = tpu.matmul %188, %190, %cst_73 {dimension_numbers = #tpu.dot_dimension_numbers<[1], [0], [0], [1], [0, 0, 1, 1], [], []>} : vector<8x32xbf16>, vector<32x96xbf16>, vector<8x96xf32> -> vector<8x96xf32>
    %c1_74 = arith.constant 1 : index
    %c0_75 = arith.constant 0 : index
    %c0_76 = arith.constant 0 : index
    %192 = vector.load %arg6[%c1_74, %c0_75, %c0_76] : memref<2x1x96xf32, #tpu.memory_space<vmem>>, vector<1x1x96xf32>
    %193 = vector.shape_cast %192 : vector<1x1x96xf32> to vector<1x96xf32>
    %194 = vector.broadcast %193 : vector<1x96xf32> to vector<8x96xf32>
    %195 = arith.addf %191, %194 : vector<8x96xf32>
    %196 = vector.extract_strided_slice %195 {offsets = [0, 0], sizes = [8, 32], strides = [1, 1]} : vector<8x96xf32> to vector<8x32xf32>
    %197 = vector.extract_strided_slice %195 {offsets = [0, 32], sizes = [8, 32], strides = [1, 1]} : vector<8x96xf32> to vector<8x32xf32>
    %198 = vector.extract_strided_slice %195 {offsets = [0, 64], sizes = [8, 32], strides = [1, 1]} : vector<8x96xf32> to vector<8x32xf32>
    %199 = vector.extract_strided_slice %196 {offsets = [0, 0], sizes = [8, 8], strides = [1, 1]} : vector<8x32xf32> to vector<8x8xf32>
    %200 = vector.extract_strided_slice %196 {offsets = [0, 8], sizes = [8, 8], strides = [1, 1]} : vector<8x32xf32> to vector<8x8xf32>
    %201 = vector.extract_strided_slice %196 {offsets = [0, 16], sizes = [8, 8], strides = [1, 1]} : vector<8x32xf32> to vector<8x8xf32>
    %202 = vector.extract_strided_slice %196 {offsets = [0, 24], sizes = [8, 8], strides = [1, 1]} : vector<8x32xf32> to vector<8x8xf32>
    %203 = vector.shape_cast %199 : vector<8x8xf32> to vector<1x8x8xf32>
    %204 = vector.shape_cast %200 : vector<8x8xf32> to vector<1x8x8xf32>
    %205 = vector.shape_cast %201 : vector<8x8xf32> to vector<1x8x8xf32>
    %206 = vector.shape_cast %202 : vector<8x8xf32> to vector<1x8x8xf32>
    %207 = tpu.concatenate %203, %204, %205, %206 in 0 : vector<1x8x8xf32>, vector<1x8x8xf32>, vector<1x8x8xf32>, vector<1x8x8xf32> -> vector<4x8x8xf32>
    %208 = vector.extract_strided_slice %197 {offsets = [0, 0], sizes = [8, 8], strides = [1, 1]} : vector<8x32xf32> to vector<8x8xf32>
    %209 = vector.extract_strided_slice %197 {offsets = [0, 8], sizes = [8, 8], strides = [1, 1]} : vector<8x32xf32> to vector<8x8xf32>
    %210 = vector.extract_strided_slice %197 {offsets = [0, 16], sizes = [8, 8], strides = [1, 1]} : vector<8x32xf32> to vector<8x8xf32>
    %211 = vector.extract_strided_slice %197 {offsets = [0, 24], sizes = [8, 8], strides = [1, 1]} : vector<8x32xf32> to vector<8x8xf32>
    %212 = vector.shape_cast %208 : vector<8x8xf32> to vector<1x8x8xf32>
    %213 = vector.shape_cast %209 : vector<8x8xf32> to vector<1x8x8xf32>
    %214 = vector.shape_cast %210 : vector<8x8xf32> to vector<1x8x8xf32>
    %215 = vector.shape_cast %211 : vector<8x8xf32> to vector<1x8x8xf32>
    %216 = tpu.concatenate %212, %213, %214, %215 in 0 : vector<1x8x8xf32>, vector<1x8x8xf32>, vector<1x8x8xf32>, vector<1x8x8xf32> -> vector<4x8x8xf32>
    %217 = vector.extract_strided_slice %198 {offsets = [0, 0], sizes = [8, 8], strides = [1, 1]} : vector<8x32xf32> to vector<8x8xf32>
    %218 = vector.extract_strided_slice %198 {offsets = [0, 8], sizes = [8, 8], strides = [1, 1]} : vector<8x32xf32> to vector<8x8xf32>
    %219 = vector.extract_strided_slice %198 {offsets = [0, 16], sizes = [8, 8], strides = [1, 1]} : vector<8x32xf32> to vector<8x8xf32>
    %220 = vector.extract_strided_slice %198 {offsets = [0, 24], sizes = [8, 8], strides = [1, 1]} : vector<8x32xf32> to vector<8x8xf32>
    %221 = vector.shape_cast %217 : vector<8x8xf32> to vector<1x8x8xf32>
    %222 = vector.shape_cast %218 : vector<8x8xf32> to vector<1x8x8xf32>
    %223 = vector.shape_cast %219 : vector<8x8xf32> to vector<1x8x8xf32>
    %224 = vector.shape_cast %220 : vector<8x8xf32> to vector<1x8x8xf32>
    %225 = tpu.concatenate %221, %222, %223, %224 in 0 : vector<1x8x8xf32>, vector<1x8x8xf32>, vector<1x8x8xf32>, vector<1x8x8xf32> -> vector<4x8x8xf32>
    %226 = arith.truncf %207 : vector<4x8x8xf32> to vector<4x8x8xbf16>
    %227 = arith.truncf %216 : vector<4x8x8xf32> to vector<4x8x8xbf16>
    "tpu.trace_start"() <{level = 10 : i32, message = "hqe,hke->hqk"}> : () -> ()
    %cst_77 = arith.constant dense<0.000000e+00> : vector<4x8x8xf32>
    %228 = tpu.matmul %226, %227, %cst_77 {dimension_numbers = #tpu.dot_dimension_numbers<[2], [2], [1], [1], [0, 0, 0, 1, 1, 1], [0], [0]>} : vector<4x8x8xbf16>, vector<4x8x8xbf16>, vector<4x8x8xf32> -> vector<4x8x8xf32>
    "tpu.trace_stop"() : () -> ()
    %cst_78 = arith.constant 0.353553385 : f32
    %229 = vector.broadcast %cst_78 : f32 to vector<4x8x8xf32>
    %230 = arith.mulf %228, %229 : vector<4x8x8xf32>
    %cst_79 = arith.constant -1.000000e+30 : f32
    %231 = vector.shape_cast %5 : vector<1x8x8xi1> to vector<1x8x8xi1>
    %232 = vector.broadcast %231 : vector<1x8x8xi1> to vector<4x8x8xi1>
    %233 = vector.broadcast %cst_79 : f32 to vector<4x8x8xf32>
    %234 = arith.select %232, %230, %233 : vector<4x8x8xi1>, vector<4x8x8xf32>
    %cst_80 = arith.constant dense<0xFF800000> : vector<4x8xf32>
    %235 = vector.multi_reduction <maximumf>, %234, %cst_80 [2] : vector<4x8x8xf32> to vector<4x8xf32>
    %cst_81 = arith.constant 0xFF800000 : f32
    %236 = vector.broadcast %cst_81 : f32 to vector<4x8xf32>
    %237 = arith.maximumf %236, %235 : vector<4x8xf32>
    %238 = vector.shape_cast %237 : vector<4x8xf32> to vector<4x8x1xf32>
    %239 = vector.broadcast %238 : vector<4x8x1xf32> to vector<4x8x8xf32>
    %240 = arith.subf %234, %239 : vector<4x8x8xf32>
    %241 = math.exp %240 : vector<4x8x8xf32>
    %cst_82 = arith.constant dense<0.000000e+00> : vector<4x8xf32>
    %242 = vector.multi_reduction <add>, %241, %cst_82 [2] : vector<4x8x8xf32> to vector<4x8xf32>
    %243 = vector.shape_cast %242 : vector<4x8xf32> to vector<4x8x1xf32>
    %244 = vector.broadcast %243 : vector<4x8x1xf32> to vector<4x8x8xf32>
    %245 = arith.divf %241, %244 : vector<4x8x8xf32>
    %246 = arith.truncf %245 : vector<4x8x8xf32> to vector<4x8x8xbf16>
    %247 = arith.truncf %225 : vector<4x8x8xf32> to vector<4x8x8xbf16>
    "tpu.trace_start"() <{level = 10 : i32, message = "hqk,hke->hqe"}> : () -> ()
    %cst_83 = arith.constant dense<0.000000e+00> : vector<4x8x8xf32>
    %248 = tpu.matmul %246, %247, %cst_83 {dimension_numbers = #tpu.dot_dimension_numbers<[2], [1], [1], [2], [0, 0, 0, 1, 1, 2], [0], [0]>} : vector<4x8x8xbf16>, vector<4x8x8xbf16>, vector<4x8x8xf32> -> vector<4x8x8xf32>
    "tpu.trace_stop"() : () -> ()
    %249 = vector.extract_strided_slice %248 {offsets = [0, 0, 0], sizes = [1, 8, 8], strides = [1, 1, 1]} : vector<4x8x8xf32> to vector<1x8x8xf32>
    %250 = vector.shape_cast %249 : vector<1x8x8xf32> to vector<8x8xf32>
    %251 = vector.extract_strided_slice %248 {offsets = [1, 0, 0], sizes = [1, 8, 8], strides = [1, 1, 1]} : vector<4x8x8xf32> to vector<1x8x8xf32>
    %252 = vector.shape_cast %251 : vector<1x8x8xf32> to vector<8x8xf32>
    %253 = vector.extract_strided_slice %248 {offsets = [2, 0, 0], sizes = [1, 8, 8], strides = [1, 1, 1]} : vector<4x8x8xf32> to vector<1x8x8xf32>
    %254 = vector.shape_cast %253 : vector<1x8x8xf32> to vector<8x8xf32>
    %255 = vector.extract_strided_slice %248 {offsets = [3, 0, 0], sizes = [1, 8, 8], strides = [1, 1, 1]} : vector<4x8x8xf32> to vector<1x8x8xf32>
    %256 = vector.shape_cast %255 : vector<1x8x8xf32> to vector<8x8xf32>
    %257 = tpu.concatenate %250, %252, %254, %256 in 1 : vector<8x8xf32>, vector<8x8xf32>, vector<8x8xf32>, vector<8x8xf32> -> vector<8x32xf32>
    %258 = arith.truncf %257 : vector<8x32xf32> to vector<8x32xbf16>
    %c1_84 = arith.constant 1 : index
    %c0_85 = arith.constant 0 : index
    %c0_86 = arith.constant 0 : index
    %259 = vector.load %arg7[%c1_84, %c0_85, %c0_86] : memref<2x32x32xbf16, #tpu.memory_space<vmem>>, vector<1x32x32xbf16>
    %260 = vector.shape_cast %259 : vector<1x32x32xbf16> to vector<32x32xbf16>
    %cst_87 = arith.constant dense<0.000000e+00> : vector<8x32xf32>
    %261 = tpu.matmul %258, %260, %cst_87 {dimension_numbers = #tpu.dot_dimension_numbers<[1], [0], [0], [1], [0, 0, 1, 1], [], []>} : vector<8x32xbf16>, vector<32x32xbf16>, vector<8x32xf32> -> vector<8x32xf32>
    %c1_88 = arith.constant 1 : index
    %c0_89 = arith.constant 0 : index
    %c0_90 = arith.constant 0 : index
    %262 = vector.load %arg8[%c1_88, %c0_89, %c0_90] : memref<2x1x32xf32, #tpu.memory_space<vmem>>, vector<1x1x32xf32>
    %263 = vector.shape_cast %262 : vector<1x1x32xf32> to vector<1x32xf32>
    %264 = vector.broadcast %263 : vector<1x32xf32> to vector<8x32xf32>
    %265 = arith.addf %261, %264 : vector<8x32xf32>
    %266 = arith.addf %161, %265 : vector<8x32xf32>
    %c1_91 = arith.constant 1 : index
    %c0_92 = arith.constant 0 : index
    %c0_93 = arith.constant 0 : index
    %267 = vector.load %arg9[%c1_91, %c0_92, %c0_93] : memref<2x1x32xf32, #tpu.memory_space<vmem>>, vector<1x1x32xf32>
    %268 = vector.shape_cast %267 : vector<1x1x32xf32> to vector<1x32xf32>
    %c1_94 = arith.constant 1 : index
    %c0_95 = arith.constant 0 : index
    %c0_96 = arith.constant 0 : index
    %269 = vector.load %arg10[%c1_94, %c0_95, %c0_96] : memref<2x1x32xf32, #tpu.memory_space<vmem>>, vector<1x1x32xf32>
    %270 = vector.shape_cast %269 : vector<1x1x32xf32> to vector<1x32xf32>
    %cst_97 = arith.constant dense<0.000000e+00> : vector<8xf32>
    %271 = vector.multi_reduction <add>, %266, %cst_97 [1] : vector<8x32xf32> to vector<8xf32>
    %272 = vector.shape_cast %271 : vector<8xf32> to vector<8x1xf32>
    %cst_98 = arith.constant 3.200000e+01 : f32
    %273 = vector.broadcast %cst_98 : f32 to vector<8x1xf32>
    %274 = arith.divf %272, %273 : vector<8x1xf32>
    %275 = arith.mulf %266, %266 : vector<8x32xf32>
    %cst_99 = arith.constant dense<0.000000e+00> : vector<8xf32>
    %276 = vector.multi_reduction <add>, %275, %cst_99 [1] : vector<8x32xf32> to vector<8xf32>
    %277 = vector.shape_cast %276 : vector<8xf32> to vector<8x1xf32>
    %cst_100 = arith.constant 3.200000e+01 : f32
    %278 = vector.broadcast %cst_100 : f32 to vector<8x1xf32>
    %279 = arith.divf %277, %278 : vector<8x1xf32>
    %280 = arith.mulf %274, %274 : vector<8x1xf32>
    %281 = arith.subf %279, %280 : vector<8x1xf32>
    %282 = vector.broadcast %274 : vector<8x1xf32> to vector<8x32xf32>
    %283 = arith.subf %266, %282 : vector<8x32xf32>
    %cst_101 = arith.constant 9.99999974E-6 : f32
    %284 = vector.broadcast %cst_101 : f32 to vector<8x1xf32>
    %285 = arith.addf %281, %284 : vector<8x1xf32>
    %286 = math.rsqrt %285 : vector<8x1xf32>
    %287 = vector.broadcast %286 : vector<8x1xf32> to vector<8x32xf32>
    %288 = arith.mulf %283, %287 : vector<8x32xf32>
    %289 = vector.broadcast %268 : vector<1x32xf32> to vector<8x32xf32>
    %290 = arith.mulf %288, %289 : vector<8x32xf32>
    %291 = vector.broadcast %270 : vector<1x32xf32> to vector<8x32xf32>
    %292 = arith.addf %290, %291 : vector<8x32xf32>
    %293 = arith.truncf %292 : vector<8x32xf32> to vector<8x32xbf16>
    %c1_102 = arith.constant 1 : index
    %c0_103 = arith.constant 0 : index
    %c0_104 = arith.constant 0 : index
    %294 = vector.load %arg11[%c1_102, %c0_103, %c0_104] : memref<2x32x128xbf16, #tpu.memory_space<vmem>>, vector<1x32x128xbf16>
    %295 = vector.shape_cast %294 : vector<1x32x128xbf16> to vector<32x128xbf16>
    %cst_105 = arith.constant dense<0.000000e+00> : vector<8x128xf32>
    %296 = tpu.matmul %293, %295, %cst_105 {dimension_numbers = #tpu.dot_dimension_numbers<[1], [0], [0], [1], [0, 0, 1, 1], [], []>} : vector<8x32xbf16>, vector<32x128xbf16>, vector<8x128xf32> -> vector<8x128xf32>
    %c1_106 = arith.constant 1 : index
    %c0_107 = arith.constant 0 : index
    %c0_108 = arith.constant 0 : index
    %297 = vector.load %arg12[%c1_106, %c0_107, %c0_108] : memref<2x1x128xf32, #tpu.memory_space<vmem>>, vector<1x1x128xf32>
    %298 = vector.shape_cast %297 : vector<1x1x128xf32> to vector<1x128xf32>
    %299 = vector.broadcast %298 : vector<1x128xf32> to vector<8x128xf32>
    %300 = arith.addf %296, %299 : vector<8x128xf32>
    %cst_109 = arith.constant 1.702000e+00 : f32
    %301 = vector.broadcast %cst_109 : f32 to vector<8x128xf32>
    %302 = arith.mulf %301, %300 : vector<8x128xf32>
    %303 = arith.negf %302 : vector<8x128xf32>
    %304 = math.exp %303 : vector<8x128xf32>
    %cst_110 = arith.constant 1.000000e+00 : f32
    %305 = vector.broadcast %cst_110 : f32 to vector<8x128xf32>
    %306 = arith.addf %305, %304 : vector<8x128xf32>
    %307 = arith.divf %305, %306 : vector<8x128xf32>
    %308 = arith.mulf %300, %307 : vector<8x128xf32>
    %309 = arith.truncf %308 : vector<8x128xf32> to vector<8x128xbf16>
    %c1_111 = arith.constant 1 : index
    %c0_112 = arith.constant 0 : index
    %c0_113 = arith.constant 0 : index
    %310 = vector.load %arg13[%c1_111, %c0_112, %c0_113] : memref<2x128x32xbf16, #tpu.memory_space<vmem>>, vector<1x128x32xbf16>
    %311 = vector.shape_cast %310 : vector<1x128x32xbf16> to vector<128x32xbf16>
    %cst_114 = arith.constant dense<0.000000e+00> : vector<8x32xf32>
    %312 = tpu.matmul %309, %311, %cst_114 {dimension_numbers = #tpu.dot_dimension_numbers<[1], [0], [0], [1], [0, 0, 1, 1], [], []>} : vector<8x128xbf16>, vector<128x32xbf16>, vector<8x32xf32> -> vector<8x32xf32>
    %c1_115 = arith.constant 1 : index
    %c0_116 = arith.constant 0 : index
    %c0_117 = arith.constant 0 : index
    %313 = vector.load %arg14[%c1_115, %c0_116, %c0_117] : memref<2x1x32xf32, #tpu.memory_space<vmem>>, vector<1x1x32xf32>
    %314 = vector.shape_cast %313 : vector<1x1x32xf32> to vector<1x32xf32>
    %315 = vector.broadcast %314 : vector<1x32xf32> to vector<8x32xf32>
    %316 = arith.addf %312, %315 : vector<8x32xf32>
    %317 = arith.addf %266, %316 : vector<8x32xf32>
    %c0_118 = arith.constant 0 : index
    %c0_119 = arith.constant 0 : index
    %318 = vector.load %arg19[%c0_118, %c0_119] : memref<8x32xf32, #tpu.memory_space<vmem>>, vector<8x32xf32>
    tpu.vector_store %arg19[%c0_118, %c0_119], %317 {strides = array<i32>} : memref<8x32xf32, #tpu.memory_space<vmem>>, vector<8x32xf32>,
    %319 = arith.index_cast %arg0 : i32 to index
    %320 = memref.load %arg1[%319] : memref<2xi32, #tpu.memory_space<smem>>
    %321 = arith.index_cast %320 : i32 to index
    %c0_120 = arith.constant 0 : index
    %322 = vector.load %arg19[%321, %c0_120] : memref<8x32xf32, #tpu.memory_space<vmem>>, vector<1x32xf32>
    %c0_121 = arith.constant 0 : index
    %c0_122 = arith.constant 0 : index
    %323 = vector.load %arg15[%c0_121, %c0_122] : memref<1x32xf32, #tpu.memory_space<vmem>>, vector<1x32xf32>
    %c0_123 = arith.constant 0 : index
    %c0_124 = arith.constant 0 : index
    %324 = vector.load %arg16[%c0_123, %c0_124] : memref<1x32xf32, #tpu.memory_space<vmem>>, vector<1x32xf32>
    %cst_125 = arith.constant dense<0.000000e+00> : vector<1xf32>
    %325 = vector.multi_reduction <add>, %322, %cst_125 [1] : vector<1x32xf32> to vector<1xf32>
    %326 = vector.shape_cast %325 : vector<1xf32> to vector<1x1xf32>
    %cst_126 = arith.constant 3.200000e+01 : f32
    %327 = vector.broadcast %cst_126 : f32 to vector<1x1xf32>
    %328 = arith.divf %326, %327 : vector<1x1xf32>
    %329 = arith.mulf %322, %322 : vector<1x32xf32>
    %cst_127 = arith.constant dense<0.000000e+00> : vector<1xf32>
    %330 = vector.multi_reduction <add>, %329, %cst_127 [1] : vector<1x32xf32> to vector<1xf32>
    %331 = vector.shape_cast %330 : vector<1xf32> to vector<1x1xf32>
    %cst_128 = arith.constant 3.200000e+01 : f32
    %332 = vector.broadcast %cst_128 : f32 to vector<1x1xf32>
    %333 = arith.divf %331, %332 : vector<1x1xf32>
    %334 = arith.mulf %328, %328 : vector<1x1xf32>
    %335 = arith.subf %333, %334 : vector<1x1xf32>
    %336 = vector.broadcast %328 : vector<1x1xf32> to vector<1x32xf32>
    %337 = arith.subf %322, %336 : vector<1x32xf32>
    %cst_129 = arith.constant 9.99999974E-6 : f32
    %338 = vector.broadcast %cst_129 : f32 to vector<1x1xf32>
    %339 = arith.addf %335, %338 : vector<1x1xf32>
    %340 = math.rsqrt %339 : vector<1x1xf32>
    %341 = vector.broadcast %340 : vector<1x1xf32> to vector<1x32xf32>
    %342 = arith.mulf %337, %341 : vector<1x32xf32>
    %343 = arith.mulf %342, %323 : vector<1x32xf32>
    %344 = arith.addf %343, %324 : vector<1x32xf32>
    %345 = arith.truncf %344 : vector<1x32xf32> to vector<1x32xbf16>
    %c0_130 = arith.constant 0 : index
    %c0_131 = arith.constant 0 : index
    %346 = vector.load %arg17[%c0_130, %c0_131] : memref<32x32xbf16, #tpu.memory_space<vmem>>, vector<32x32xbf16>
    %cst_132 = arith.constant dense<0.000000e+00> : vector<1x32xf32>
    %347 = tpu.matmul %345, %346, %cst_132 {dimension_numbers = #tpu.dot_dimension_numbers<[1], [0], [0], [1], [0, 0, 1, 1], [], []>} : vector<1x32xbf16>, vector<32x32xbf16>, vector<1x32xf32> -> vector<1x32xf32>
    %348 = arith.mulf %347, %347 : vector<1x32xf32>
    %cst_133 = arith.constant dense<0.000000e+00> : vector<1xf32>
    %349 = vector.multi_reduction <add>, %348, %cst_133 [1] : vector<1x32xf32> to vector<1xf32>
    %350 = vector.shape_cast %349 : vector<1xf32> to vector<1x1xf32>
    %cst_134 = arith.constant 9.99999996E-13 : f32
    %351 = vector.broadcast %cst_134 : f32 to vector<1x1xf32>
    %352 = arith.addf %350, %351 : vector<1x1xf32>
    %353 = math.rsqrt %352 : vector<1x1xf32>
    %354 = vector.broadcast %353 : vector<1x1xf32> to vector<1x32xf32>
    %355 = arith.mulf %347, %354 : vector<1x32xf32>
    %356 = vector.shape_cast %355 : vector<1x32xf32> to vector<1x1x32xf32>
    %c0_135 = arith.constant 0 : index
    %c0_136 = arith.constant 0 : index
    %c0_137 = arith.constant 0 : index
    %357 = vector.load %arg18[%c0_135, %c0_136, %c0_137] : memref<1x1x32xf32, #tpu.memory_space<vmem>>, vector<1x1x32xf32>
    tpu.vector_store %arg18[%c0_135, %c0_136, %c0_137], %356 {strides = array<i32>} : memref<1x1x32xf32, #tpu.memory_space<vmem>>, vector<1x1x32xf32>,
    return
  }
  func.func @transform_0(%arg0: i32, %arg1: memref<2xi32, #tpu.memory_space<smem>>) -> (i32, i32, i32) {
    %c0_i32 = arith.constant 0 : i32
    %c0_i32_0 = arith.constant 0 : i32
    %c0_i32_1 = arith.constant 0 : i32
    return %arg0, %c0_i32, %c0_i32_0 : i32, i32, i32
  }
  func.func @transform_1(%arg0: i32, %arg1: memref<2xi32, #tpu.memory_space<smem>>) -> (i32, i32, i32) {
    %c0_i32 = arith.constant 0 : i32
    %c0_i32_0 = arith.constant 0 : i32
    %c0_i32_1 = arith.constant 0 : i32
    %c0_i32_2 = arith.constant 0 : i32
    return %c0_i32, %c0_i32_0, %c0_i32_1 : i32, i32, i32
  }
  func.func @transform_2(%arg0: i32, %arg1: memref<2xi32, #tpu.memory_space<smem>>) -> (i32, i32, i32) {
    %c0_i32 = arith.constant 0 : i32
    %c0_i32_0 = arith.constant 0 : i32
    %c0_i32_1 = arith.constant 0 : i32
    %c0_i32_2 = arith.constant 0 : i32
    return %c0_i32, %c0_i32_0, %c0_i32_1 : i32, i32, i32
  }
  func.func @transform_3(%arg0: i32, %arg1: memref<2xi32, #tpu.memory_space<smem>>) -> (i32, i32, i32) {
    %c0_i32 = arith.constant 0 : i32
    %c0_i32_0 = arith.constant 0 : i32
    %c0_i32_1 = arith.constant 0 : i32
    %c0_i32_2 = arith.constant 0 : i32
    return %c0_i32, %c0_i32_0, %c0_i32_1 : i32, i32, i32
  }
  func.func @transform_4(%arg0: i32, %arg1: memref<2xi32, #tpu.memory_space<smem>>) -> (i32, i32, i32) {
    %c0_i32 = arith.constant 0 : i32
    %c0_i32_0 = arith.constant 0 : i32
    %c0_i32_1 = arith.constant 0 : i32
    %c0_i32_2 = arith.constant 0 : i32
    return %c0_i32, %c0_i32_0, %c0_i32_1 : i32, i32, i32
  }
  func.func @transform_5(%arg0: i32, %arg1: memref<2xi32, #tpu.memory_space<smem>>) -> (i32, i32, i32) {
    %c0_i32 = arith.constant 0 : i32
    %c0_i32_0 = arith.constant 0 : i32
    %c0_i32_1 = arith.constant 0 : i32
    %c0_i32_2 = arith.constant 0 : i32
    return %c0_i32, %c0_i32_0, %c0_i32_1 : i32, i32, i32
  }
  func.func @transform_6(%arg0: i32, %arg1: memref<2xi32, #tpu.memory_space<smem>>) -> (i32, i32, i32) {
    %c0_i32 = arith.constant 0 : i32
    %c0_i32_0 = arith.constant 0 : i32
    %c0_i32_1 = arith.constant 0 : i32
    %c0_i32_2 = arith.constant 0 : i32
    return %c0_i32, %c0_i32_0, %c0_i32_1 : i32, i32, i32
  }
  func.func @transform_7(%arg0: i32, %arg1: memref<2xi32, #tpu.memory_space<smem>>) -> (i32, i32, i32) {
    %c0_i32 = arith.constant 0 : i32
    %c0_i32_0 = arith.constant 0 : i32
    %c0_i32_1 = arith.constant 0 : i32
    %c0_i32_2 = arith.constant 0 : i32
    return %c0_i32, %c0_i32_0, %c0_i32_1 : i32, i32, i32
  }
  func.func @transform_8(%arg0: i32, %arg1: memref<2xi32, #tpu.memory_space<smem>>) -> (i32, i32, i32) {
    %c0_i32 = arith.constant 0 : i32
    %c0_i32_0 = arith.constant 0 : i32
    %c0_i32_1 = arith.constant 0 : i32
    %c0_i32_2 = arith.constant 0 : i32
    return %c0_i32, %c0_i32_0, %c0_i32_1 : i32, i32, i32
  }
  func.func @transform_9(%arg0: i32, %arg1: memref<2xi32, #tpu.memory_space<smem>>) -> (i32, i32, i32) {
    %c0_i32 = arith.constant 0 : i32
    %c0_i32_0 = arith.constant 0 : i32
    %c0_i32_1 = arith.constant 0 : i32
    %c0_i32_2 = arith.constant 0 : i32
    return %c0_i32, %c0_i32_0, %c0_i32_1 : i32, i32, i32
  }
  func.func @transform_10(%arg0: i32, %arg1: memref<2xi32, #tpu.memory_space<smem>>) -> (i32, i32, i32) {
    %c0_i32 = arith.constant 0 : i32
    %c0_i32_0 = arith.constant 0 : i32
    %c0_i32_1 = arith.constant 0 : i32
    %c0_i32_2 = arith.constant 0 : i32
    return %c0_i32, %c0_i32_0, %c0_i32_1 : i32, i32, i32
  }
  func.func @transform_11(%arg0: i32, %arg1: memref<2xi32, #tpu.memory_space<smem>>) -> (i32, i32, i32) {
    %c0_i32 = arith.constant 0 : i32
    %c0_i32_0 = arith.constant 0 : i32
    %c0_i32_1 = arith.constant 0 : i32
    %c0_i32_2 = arith.constant 0 : i32
    return %c0_i32, %c0_i32_0, %c0_i32_1 : i32, i32, i32
  }
  func.func @transform_12(%arg0: i32, %arg1: memref<2xi32, #tpu.memory_space<smem>>) -> (i32, i32, i32) {
    %c0_i32 = arith.constant 0 : i32
    %c0_i32_0 = arith.constant 0 : i32
    %c0_i32_1 = arith.constant 0 : i32
    %c0_i32_2 = arith.constant 0 : i32
    return %c0_i32, %c0_i32_0, %c0_i32_1 : i32, i32, i32
  }
  func.func @transform_13(%arg0: i32, %arg1: memref<2xi32, #tpu.memory_space<smem>>) -> (i32, i32) {
    %c0_i32 = arith.constant 0 : i32
    %c0_i32_0 = arith.constant 0 : i32
    %c0_i32_1 = arith.constant 0 : i32
    return %c0_i32, %c0_i32_0 : i32, i32
  }
  func.func @transform_14(%arg0: i32, %arg1: memref<2xi32, #tpu.memory_space<smem>>) -> (i32, i32) {
    %c0_i32 = arith.constant 0 : i32
    %c0_i32_0 = arith.constant 0 : i32
    %c0_i32_1 = arith.constant 0 : i32
    return %c0_i32, %c0_i32_0 : i32, i32
  }
  func.func @transform_15(%arg0: i32, %arg1: memref<2xi32, #tpu.memory_space<smem>>) -> (i32, i32) {
    %c0_i32 = arith.constant 0 : i32
    %c0_i32_0 = arith.constant 0 : i32
    %c0_i32_1 = arith.constant 0 : i32
    return %c0_i32, %c0_i32_0 : i32, i32
  }
  func.func @transform_16(%arg0: i32, %arg1: memref<2xi32, #tpu.memory_space<smem>>) -> (i32, i32, i32) {
    %c0_i32 = arith.constant 0 : i32
    %c0_i32_0 = arith.constant 0 : i32
    %c0_i32_1 = arith.constant 0 : i32
    return %arg0, %c0_i32, %c0_i32_0 : i32, i32, i32
  }
}

</mosaic_0001>

<bundles_post_ra>
// kernel: tpu_custom_call.1
= control target key start
LH: loop header
LB: loop body
LE: loop exit
PB: predicated region body
PF: predicated region fallthrough
CT: control target
= control target key end

     0   :  { %s3651_s0 = inlined_call_operand.vmem [shape: s32[2], index: 0, kind: input, shape index: {}]   ;;  %s3652_s1 = inlined_call_operand.vmem [shape: f32[2,8,32], index: 1, kind: input, shape index: {}]   ;;  %s3653_s2 = inlined_call_operand.vmem [shape: f32[2,1,32], index: 2, kind: input, shape index: {}]   ;;  %s3654_s3 = inlined_call_operand.vmem [shape: f32[2,1,32], index: 3, kind: input, shape index: {}]   ;;  %s3655_s4 = inlined_call_operand.vmem [shape: bf16[2,32,96], index: 4, kind: input, shape index: {}]   ;;  %s3656_s5 = inlined_call_operand.vmem [shape: f32[2,1,96], index: 5, kind: input, shape index: {}]   ;;  %s3657_s6 = inlined_call_operand.vmem [shape: bf16[2,32,32], index: 6, kind: input, shape index: {}]   ;;  %s3658_s7 = inlined_call_operand.vmem [shape: f32[2,1,32], index: 7, kind: input, shape index: {}]   ;;  %s3659_s8 = inlined_call_operand.vmem [shape: f32[2,1,32], index: 8, kind: input, shape index: {}]   ;;  %s3660_s9 = inlined_call_operand.vmem [shape: f32[2,1,32], index: 9, kind: input, shape index: {}]   ;;  %s3661_s10 = inlined_call_operand.vmem [shape: bf16[2,32,128], index: 10, kind: input, shape index: {}]   ;;  %s3662_s11 = inlined_call_operand.vmem [shape: f32[2,1,128], index: 11, kind: input, shape index: {}]   ;;  %s3663_s12 = inlined_call_operand.vmem [shape: bf16[2,128,32], index: 12, kind: input, shape index: {}]   ;;  %s3664_s13 = inlined_call_operand.vmem [shape: f32[2,1,32], index: 13, kind: input, shape index: {}]   ;;  %s3665_s14 = inlined_call_operand.vmem [shape: f32[1,32], index: 14, kind: input, shape index: {}]   ;;  %s3666_s15 = inlined_call_operand.vmem [shape: f32[1,32], index: 15, kind: input, shape index: {}]   ;;  %s3667_s16 = inlined_call_operand.vmem [shape: bf16[32,32], index: 16, kind: input, shape index: {}]   ;;  %s3668_s17 = inlined_call_operand.hbm [shape: f32[2,1,32], index: 17, kind: output, shape index: {}]  }
   0x1   :  { %3679 = sst [smem:[#allocation10_spill]] %s3651_s0 }
   0x2   :  { %3680 = sst [smem:[#allocation11_spill]] %s3652_s1  ;;  %s3686_s26 = sld [smem:[#allocation10_spill]] }
   0x3   :  { %3681 = sst [smem:[#allocation12_spill]] %s3653_s2 }
   0x4   :  { %3682 = sst [smem:[#allocation13_spill]] %s3654_s3 }
   0x5   :  { %3683 = sst [smem:[#allocation14_spill]] %s3655_s4 }
   0x6   :  { %3684 = sst [smem:[#allocation15_spill]] %s3656_s5 }
   0x7   :  { %3685 = sst [smem:[#allocation16_spill]] %s3662_s11 }
   0x8   :  { %s22_s11 = sshll.u32 %s3686_s26, 4  ;;  %s23_s11 = int_to_ptr.vmem [resolvable:$true] %s22_s11 }
   0x9   :  { %s2937_s27 = scalar_lea.vmem %s23_s11, 16  ;;  %p2942_p1 = scmp.lt.s32.totalorder %s23_s11, %s23_s11 }
   0xa   :  { %p2938_p0 = scmp.ne.s32.totalorder %s23_s11, %s2937_s27  ;;  %p2943_p2 = scmp.lt.s32.totalorder %s2937_s27, %s2937_s27 }
   0xc   :  { %p2944_p3 = por %p2943_p2, %p2942_p1 }
   0xe   :  { %p2945_p4 = pnand %p2944_p3, %p2938_p0 }
  0x10   :  { %2948 = shalt.err (!%p2945_p4)  }
  0x11   :  { %s3015_s28 = smov [#allocation4]  }
  0x12   :  { %25 = dma.vmem_to_smem %s23_s11, 16, %s3015_s28, [#allocation3] }
  0x13   :  { %2993 = dma.done.wait [#allocation3], 16 }
  0x14   :  { %2994 = vsyncadd [#allocation3], 4294967280 }
  0x15   :  { %27 = sfence }
  0x16   :  { %28 = vsyncpa [#allocation6], 0 }
  0x17   :  { %30 = vsyncpa [#allocation6 + $0x1], 0  ;;  %s3120_s29 = smov 0   ;;  %s3122_s0 = smov 0  }
  0x18   :  { %s3124_s30 = smov 0   ;;  %s3126_s18 = smov 0  }
  0x19 LB: > { %s3141_s11 = sadd.s32 4294967295, %s3013_s18   ;;  %s2427_s19 = sadd.s32 4294967294, %s3013_s18   ;;  %s3013_s18 = sphi %s3126_s18, %s3709_s18   ;;  %s3009_s30 = sphi %s3124_s30, %s3708_s30   ;;  %s3005_s0 = sphi %s3122_s0, %s3707_s0   ;;  %s3001_s29 = sphi %s3120_s29, %s3706_s29  }
  0x1a   : > { %s3145_s1 = sadd.s32 1, %s3013_s18   ;;  %s384_s20 = sadd.s32 1, %s3009_s30 }
  0x1b   : > { %s381_s21 = ssub.s32 %s3013_s18, %s3145_s1  ;;  %p394_p5 = scmp.ne.s32.totalorder %s3009_s30, %s3005_s0 }
  0x1c   : > { %p382_p6 = scmp.eq.s32.totalorder %s381_s21, 0  ;;  %p395_p7 = scmp.eq.s32.totalorder %s3141_s11, 1 }
  0x1d   : > { %p400_p8 = scmp.ne.s32.totalorder %s3005_s0, %s3001_s29  ;;  %p401_p9 = scmp.eq.s32.totalorder %s2427_s19, 1 }
  0x1e   : > { %s3156_s22 = scalar_select %p382_p6, %s3009_s30, %s384_s20  }
  0x1f   : > { %p3158_p10 = por %p395_p7, %p394_p5  ;;  %p3162_p11 = por %p401_p9, %p400_p8 }
  0x20   : > { %3687 = sst [smem:[#allocation9_spill]] %s3156_s22  ;;  %p2430_p12 = scmp.ge.s32.totalorder %s3013_s18, 1 }
  0x21   : > { %p471_p13 = scmp.lt.s32.totalorder %s3013_s18, 3 }
  0x23   : > { %p472_p0 = pnand %p2430_p12, %p471_p13 }
  0x24   : > { %p519_p1 = scmp.lt.s32.totalorder (!%p472_p0), %s3141_s11, 1  ;;  %vm532_vm0 = vcmask (!%p472_p0), 261120   ;;  %s3690_s19 = sld [smem:[#allocation11_spill]] (!%p472_p0)  ;;  %v3016_v5 = vmov (!%p472_p0), 0.0   ;;  %vm3017_vm1 = vmmov (!%p472_p0), 0   ;;  %vm647_vm2 = vcmask (!%p472_p0), 64512  }
  0x25   : > { %475 = sbr.rel (%p472_p0) target bundleno = 5303 (0x14b7), region = 84  ;;  %s3691_s4 = sld [smem:[#allocation14_spill]] (!%p472_p0)  ;;  %2613 = vmatprep.subr.bf16.mxu1 (!%p472_p0), %v3016_v5  ;;  %2617 = vmatprep.mubr.msk.bf16.mxu1 (!%p472_p0), %vm3017_vm1, %v3016_v5  ;;  %v525_v43 = vlaneseq (!%p472_p0)  ;;  %vm904_vm4 = vcmask (!%p472_p0), 1043456   ;;  %vm1105_vm5 = vcmask (!%p472_p0), 130048   ;;  %vm1107_vm6 = vcmask (!%p472_p0), 195584  }
  0x26   : > { %2627 = vmatprep.subr.bf16.mxu0 (!%p472_p0), %v3016_v5  ;;  %2629 = vmatprep.mubr.msk.bf16.mxu0 (!%p472_p0), %vm3017_vm1, %v3016_v5  ;;  %s3692_s2 = sld [smem:[#allocation12_spill]] (!%p472_p0)  ;;  %s3693_s3 = sld [smem:[#allocation13_spill]] (!%p472_p0)  ;;  %vm2272_vm7 = vcmask (!%p472_p0), 253952  }
  0x27   : > { %s3694_s5 = sld [smem:[#allocation15_spill]] (!%p472_p0)  ;;  %s3020_s22 = smov (!%p472_p0), 112   ;;  %v526_v44 = vshrl.u32 (!%p472_p0), %v525_v43, 7  ;;  %v528_v45 = vand.u32 (!%p472_p0), 127, %v525_v43 }
  0x28   : > { %s3672_s27 = smov (!%p472_p0), 96   ;;  %s3670_s28 = smov (!%p472_p0), 64  }
  0x29   : > { %vm3250_vm3 = vcmp.le.s32.totalorder (!%p472_p0), %v528_v45, %v526_v44  ;;  %s517_s21 = sand.u32 (!%p472_p0), 1, %s3005_s0  }
  0x2b   : > { %v2855_v4 = vld [vmem:[%s3691_s4] sm:$0xff] (!%p472_p0)   ;;  %v2856_v6 = vld [vmem:[%s3691_s4 + $0x8] sm:$0xff] (!%p472_p0)  }
  0x2c   : > { %s520_s25 = scalar_select %p519_p1, %s3141_s11, 1  ;;  %2614 = vmatpush3.bf16.msra.mxu1 %v2855_v4  ;;  %v2432_v16 = vld [vmem:[%s3692_s2] ss:$0 sm:$0xff] }
  0x2d   : > { %2615 = vmatprep.subr.bf16.mxu1 %v3016_v5  ;;  %v2433_v18 = vld [vmem:[%s3693_s3] ss:$0 sm:$0xff] }
  0x2e   : > { %s2431_s26 = sshll.u32 %s520_s25, 3  ;;  %v2434_v22 = vld [vmem:[%s3694_s5] ss:$0 sm:$0xff]  ;;  %s3677_s25 = smov 104  }
  0x2f   : > { %s522_s20 = scalar_lea.vmem %s3690_s19, %s2431_s26  ;;  %s3678_s26 = smov 120  }
  0x30   : > { %v3173_v0 = vld [vmem:[%s522_s20] sm:$0xff]  ;;  %2616 = vmatpush3.bf16.msra.mxu1 %v2856_v6  ;;  %s3675_s19 = smov 16  }
  0x31   : > { %v533_v1 = vsel %vm532_vm0, %v3173_v0, 0.0  ;;  %v538_v2 = vmul.f32 %v3173_v0, %v3173_v0  ;;  %2621 = vmatprep.subr.bf16.mxu1 %v3016_v5 }
  0x32   : > { %534 = vadd.xlane.f32.xlu0 %v533_v1 }
  0x33   : > { %v539_v3 = vsel %vm532_vm0, %v538_v2, 0.0 }
  0x36   : > { %540 = vadd.xlane.f32.xlu0 %v539_v3 }
  0xbf   : > { %v535_v7 = vpop.xlane.xlu0 %534 }
  0xc0   : > { %v537_v8 = vmul.f32 0.03125, %v535_v7 }
  0xc2   : > { %v543_v10 = vmul.f32 %v537_v8, %v537_v8  ;;  %v545_v14 = vsub.f32 %v3173_v0, %v537_v8 }
  0xc3   : > { %v541_v9 = vpop.xlane.xlu0 %540 }
  0xc4   : > { %v542_v11 = vmul.f32 0.03125, %v541_v9 }
  0xc6   : > { %v544_v12 = vsub.f32 %v542_v11, %v543_v10 }
  0xc8   : > { %v546_v13 = vadd.f32 1e-05, %v544_v12 }
  0xca   : > { %2885 = vrsqrt.f32 %v546_v13 }
  0xd4   : > { %v2886_v15 = vpop.eup %2885 }
  0xd5   : > { %v548_v17 = vmul.f32 %v2886_v15, %v545_v14 }
  0xd7   : > { %v555_v19 = vmul.f32 %v2432_v16, %v548_v17 }
  0xd9   : > { %v562_v20 = vadd.f32 %v2433_v18, %v555_v19 }
  0xdb   : > { %v563_v21 = vpack.c.bf16 %v562_v20, %v562_v20 }
  0xdd   : > { %2618 = vmatmul.mubr.msk.bf16.vlgmr.msra.gmra.mrb[0].mxu1 %vm532_vm0, %v563_v21 }
  0xde   : > { %2623 = vmatprep.mubr.msk.bf16.mxu1 %vm3017_vm1, %v3016_v5 }
 0x1b0   : > { %v624_v23 = vpop.f32.mrb[0].mxu1 }
 0x1b1   : > { %v625_v24 = vadd.f32 %v2434_v22, %v624_v23  ;;  %v2619_v25 = vpop.f32.mrb[1].mxu1 }
 0x1b2   : > { %v627_v26 = vpop.f32.mrb[2].mxu1 }
 0x1b3   : > { %637 = vrot.lane.b32.xlu0 %v625_v24, %s3677_s25  ;;  %631 = vrot.lane.b32.xlu1 %v625_v24, %s3678_s26  ;;  %v2620_v27 = vpop.f32.mrb[3].mxu1  ;;  %v3210_v28 = vpack.c.bf16 %v625_v24, %v625_v24  ;;  %s3699_s26 = smov 104   ;;  %s3700_s25 = smov 96  }
 0x1b7   : > { %634 = vrot.lane.b32.xlu1 %v625_v24, %s3020_s22 }
 0x1bb   : > { %645 = vrot.lane.b32.xlu1 %v3210_v28, %s3672_s27 }
 0x225   : > { %v632_v29 = vpop.permute.xlu1 %631  ;;  %v638_v33 = vpop.permute.xlu0 %637 }
 0x226   : > { %v3214_v30 = vpack.c.bf16 %v632_v29, %v632_v29  ;;  %v3222_v35 = vpack.c.bf16 %v638_v33, %v638_v33 }
 0x228   : > { %695 = vrot.lane.b32.xlu1 %v3214_v30, %s3672_s27 }
 0x229   : > { %v635_v31 = vpop.permute.xlu1 %634 }
 0x22a   : > { %v3218_v32 = vpack.c.bf16 %v635_v31, %v635_v31 }
 0x22c   : > { %744 = vrot.lane.b32.xlu1 %v3218_v32, %s3672_s27 }
 0x22d   : > { %v646_v34 = vpop.permute.xlu1 %645 }
 0x22e   : > { %v652_v36 = vsel %vm647_vm2, %v646_v34, 0 }
 0x22f   : > { %2622 = vmatpush3.bf16.xpose.msra.mxu1 %v652_v36 }
 0x230   : > { %793 = vrot.lane.b32.xlu1 %v3222_v35, %s3672_s27  ;;  %2633 = vmatprep.subr.bf16.mxu1 %v3016_v5  ;;  %s3676_s27 = smov 8  }
 0x236   : > { %2624 = vmatmul.mubr.msk.bf16.vlgmr.msra.gmra.mrb[4].mxu1 %vm647_vm2, %v3210_v28 }
 0x237   : > { %2635 = vmatprep.mubr.msk.bf16.mxu1 %vm3017_vm1, %v3016_v5 }
 0x29a   : > { %v696_v37 = vpop.permute.xlu1 %695 }
 0x29b   : > { %v701_v38 = vsel %vm647_vm2, %v696_v37, 0 }
 0x29c   : > { %2628 = vmatpush3.bf16.xpose.msra.mxu0 %v701_v38 }
 0x29d   : > { %2639 = vmatprep.subr.bf16.mxu0 %v3016_v5 }
 0x29e   : > { %v745_v39 = vpop.permute.xlu1 %744 }
 0x29f   : > { %v750_v40 = vsel %vm647_vm2, %v745_v39, 0 }
 0x2a0   : > { %2634 = vmatpush3.bf16.xpose.msra.mxu1 %v750_v40 }
 0x2a1   : > { %2645 = vmatprep.subr.bf16.mxu1 %v3016_v5 }
 0x2a2   : > { %v794_v41 = vpop.permute.xlu1 %793 }
 0x2a3   : > { %v799_v42 = vsel %vm647_vm2, %v794_v41, 0  ;;  %2630 = vmatmul.mubr.msk.bf16.vlgmr.msra.gmra.mrb[0].mxu0 %vm647_vm2, %v3214_v30 }
 0x2a4   : > { %2640 = vmatpush3.bf16.xpose.msra.mxu0 %v799_v42  ;;  %2641 = vmatprep.mubr.msk.bf16.mxu0 %vm3017_vm1, %v3016_v5 }
 0x2a5   : > { %2651 = vmatprep.subr.bf16.mxu0 %v3016_v5 }
 0x2a7   : > { %2636 = vmatmul.mubr.msk.bf16.vlgmr.msra.gmra.mrb[8].mxu1 %vm647_vm2, %v3218_v32 }
 0x2a8   : > { %2647 = vmatprep.mubr.msk.bf16.mxu1 %vm3017_vm1, %v3016_v5 }
 0x2ab   : > { %2642 = vmatmul.mubr.msk.bf16.vlgmr.msra.gmra.mrb[4].mxu0 %vm647_vm2, %v3222_v35 }
 0x2ac   : > { %2653 = vmatprep.mubr.msk.bf16.mxu0 %vm3017_vm1, %v3016_v5 }
 0x309   : > { %v688_v46 = vpop.f32.mrb[4].mxu1 }
 0x30a   : > { %v841_v48 = vmul.f32 0.35355338, %v688_v46  ;;  %v2625_v49 = vpop.f32.mrb[5].mxu1 }
 0x30b   : > { %v691_v50 = vpop.f32.mrb[6].mxu1 }
 0x30c   : > { %v2626_v51 = vpop.f32.mrb[7].mxu1  ;;  %v847_v52 = vsel %vm3250_vm3, %v841_v48, -1e+30 }
 0x30d   : > { %v851_v53 = vsel %vm647_vm2, %v847_v52, -inf }
 0x30e   : > { %852 = vmax.xlane.f32.xlu1 %v851_v53 }
 0x376   : > { %v737_v54 = vpop.f32.mrb[0].mxu0 }
 0x377   : > { %v842_v55 = vmul.f32 0.35355338, %v737_v54  ;;  %v2631_v56 = vpop.f32.mrb[1].mxu0 }
 0x378   : > { %v740_v57 = vpop.f32.mrb[2].mxu0 }
 0x379   : > { %v2632_v58 = vpop.f32.mrb[3].mxu0  ;;  %v848_v59 = vsel %vm3250_vm3, %v842_v55, -1e+30 }
 0x37a   : > { %v786_v60 = vpop.f32.mrb[8].mxu1  ;;  %v854_v61 = vsel %vm647_vm2, %v848_v59, -inf }
 0x37b   : > { %v843_v62 = vmul.f32 0.35355338, %v786_v60  ;;  %855 = vmax.xlane.f32.xlu0 %v854_v61  ;;  %v2637_v63 = vpop.f32.mrb[9].mxu1 }
 0x37c   : > { %v789_v1 = vpop.f32.mrb[10].mxu1  ;;  %v2858_v63 = vld [vmem:[%s3657_s6 + $0x8] sm:$0xff]  }
 0x37d   : > { %v2638_v2 = vpop.f32.mrb[11].mxu1  ;;  %v849_v3 = vsel %vm3250_vm3, %v843_v62, -1e+30  ;;  %v2857_v62 = vld [vmem:[%s3657_s6] sm:$0xff]  }
 0x37e   : > { %v835_v4 = vpop.f32.mrb[4].mxu0  ;;  %v857_v6 = vsel %vm647_vm2, %v849_v3, -inf }
 0x37f   : > { %v844_v7 = vmul.f32 0.35355338, %v835_v4  ;;  %v2643_v8 = vpop.f32.mrb[5].mxu0  ;;  %858 = vmax.xlane.f32.xlu1 %v857_v6 }
 0x380   : > { %v838_v9 = vpop.f32.mrb[6].mxu0 }
 0x381   : > { %v2644_v10 = vpop.f32.mrb[7].mxu0  ;;  %v850_v11 = vsel %vm3250_vm3, %v844_v7, -1e+30 }
 0x382   : > { %v860_v12 = vsel %vm647_vm2, %v850_v11, -inf }
 0x383   : > { %861 = vmax.xlane.f32.xlu0 %v860_v12 }
 0x390   : > { %899 = vrot.lane.b32.xlu1 %v3210_v28, %s3670_s28 }
 0x39b   : > { %v853_v13 = vpop.xlane.xlu1 %852 }
 0x39c   : > { %v863_v14 = vsub.f32 %v847_v52, %v853_v13 }
 0x39e   : > { %v867_v15 = vmul.f32 1.442695, %v863_v14 }
 0x3a0   : > { %2887 = vpow2.f32 %v867_v15 }
 0x3aa   : > { %v2888_v16 = vpop.eup %2887 }
 0x3ab   : > { %v875_v17 = vsel %vm647_vm2, %v2888_v16, 0.0 }
 0x3b4   : > { %876 = vadd.xlane.f32.xlu1 %v875_v17 }
 0x408   : > { %v856_v18 = vpop.xlane.xlu0 %855 }
 0x409   : > { %v864_v19 = vsub.f32 %v848_v59, %v856_v18 }
 0x40b   : > { %v869_v20 = vmul.f32 1.442695, %v864_v19 }
 0x40c   : > { %v859_v21 = vpop.xlane.xlu1 %858 }
 0x40d   : > { %2889 = vpow2.f32 %v869_v20  ;;  %v865_v22 = vsub.f32 %v849_v3, %v859_v21  ;;  %v2446_v21 = vld [vmem:[%s3658_s7] ss:$0 sm:$0xff] }
 0x40f   : > { %v871_v23 = vmul.f32 1.442695, %v865_v22 }
 0x410   : > { %v862_v24 = vpop.xlane.xlu0 %861  ;;  %v900_v25 = vpop.permute.xlu1 %899 }
 0x411   : > { %2891 = vpow2.f32 %v871_v23  ;;  %v866_v26 = vsub.f32 %v850_v11, %v862_v24  ;;  %v906_v27 = vsel %vm904_vm4, %v900_v25, 0 }
 0x412   : > { %2646 = vmatpush3.bf16.msra.mxu1 %v906_v27 }
 0x413   : > { %v873_v28 = vmul.f32 1.442695, %v866_v26  ;;  %2657 = vmatprep.subr.bf16.mxu1 %v3016_v5 }
 0x415   : > { %2893 = vpow2.f32 %v873_v28 }
 0x417   : > { %v2890_v29 = vpop.eup %2889 }
 0x418   : > { %v878_v31 = vsel %vm647_vm2, %v2890_v29, 0.0 }
 0x419   : > { %879 = vadd.xlane.f32.xlu0 %v878_v31 }
 0x41b   : > { %v2892_v33 = vpop.eup %2891 }
 0x41c   : > { %v881_v34 = vsel %vm647_vm2, %v2892_v33, 0.0 }
 0x41d   : > { %882 = vadd.xlane.f32.xlu1 %v881_v34 }
 0x41f   : > { %v2894_v36 = vpop.eup %2893 }
 0x420   : > { %v884_v37 = vsel %vm647_vm2, %v2894_v36, 0.0 }
 0x421   : > { %885 = vadd.xlane.f32.xlu0 %v884_v37 }
 0x42e   : > { %996 = vrot.lane.b32.xlu1 %v3218_v32, %s3670_s28 }
 0x432   : > { %1044 = vrot.lane.b32.xlu1 %v3222_v35, %s3670_s28 }
 0x437   : > { %948 = vrot.lane.b32.xlu0 %v3214_v30, %s3670_s28  ;;  %s3674_s28 = smov 24  }
 0x441   : > { %v877_v38 = vpop.xlane.xlu1 %876 }
 0x442   : > { %2895 = vrcp.f32 %v877_v38 }
 0x44c   : > { %v2896_v39 = vpop.eup %2895 }
 0x44d   : > { %v888_v40 = vmul.f32 %v2896_v39, %v2888_v16 }
 0x44f   : > { %v895_v41 = vpack.c.bf16 %v888_v40, %v888_v40 }
 0x451   : > { %2648 = vmatmul.mubr.msk.bf16.vlgmr.msra.gmra.mrb[12].mxu1 %vm647_vm2, %v895_v41 }
 0x452   : > { %2659 = vmatprep.mubr.msk.bf16.mxu1 %vm3017_vm1, %v3016_v5 }
 0x4a6   : > { %v880_v42 = vpop.xlane.xlu0 %879 }
 0x4a7   : > { %2897 = vrcp.f32 %v880_v42 }
 0x4aa   : > { %v883_v43 = vpop.xlane.xlu1 %882 }
 0x4ab   : > { %2899 = vrcp.f32 %v883_v43 }
 0x4ae   : > { %v886_v32 = vpop.xlane.xlu0 %885  ;;  %v997_v44 = vpop.permute.xlu1 %996 }
 0x4af   : > { %2901 = vrcp.f32 %v886_v32  ;;  %v1002_v35 = vsel %vm904_vm4, %v997_v44, 0  ;;  %v2450_v32 = vld [vmem:[%s3659_s8] ss:$0 sm:$0xff] }
 0x4b0   : > { %2658 = vmatpush3.bf16.msra.mxu1 %v1002_v35  ;;  %v2451_v35 = vld [vmem:[%s3660_s9] ss:$0 sm:$0xff] }
 0x4b1   : > { %v2898_v30 = vpop.eup %2897  ;;  %2669 = vmatprep.subr.bf16.mxu1 %v3016_v5 }
 0x4b2   : > { %v890_v45 = vmul.f32 %v2898_v30, %v2890_v29  ;;  %v949_v46 = vpop.permute.xlu0 %948  ;;  %v1045_v49 = vpop.permute.xlu1 %1044 }
 0x4b3   : > { %v954_v48 = vsel %vm904_vm4, %v949_v46, 0  ;;  %v1050_v53 = vsel %vm904_vm4, %v1045_v49, 0  ;;  %v2862_v49 = vld [vmem:[%s3663_s12 + $0x8] sm:$0xff]  }
 0x4b4   : > { %2652 = vmatpush3.bf16.msra.mxu0 %v954_v48  ;;  %v896_v50 = vpack.c.bf16 %v890_v45, %v890_v45  ;;  %v2861_v48 = vld [vmem:[%s3663_s12] sm:$0xff]  }
 0x4b5   : > { %v2900_v51 = vpop.eup %2899  ;;  %2663 = vmatprep.subr.bf16.mxu0 %v3016_v5 }
 0x4b6   : > { %v892_v52 = vmul.f32 %v2900_v51, %v2892_v33  ;;  %v2859_v33 = vld [vmem:[%s3661_s10] sm:$0xff]   ;;  %v2864_v51 = vld [vmem:[%s3663_s12 + $0x18] sm:$0xff]  }
 0x4b7   : > { %2654 = vmatmul.mubr.msk.bf16.vlgmr.msra.gmra.mrb[8].mxu0 %vm647_vm2, %v896_v50  ;;  %v2863_v50 = vld [vmem:[%s3663_s12 + $0x10] sm:$0xff]  }
 0x4b8   : > { %2664 = vmatpush3.bf16.msra.mxu0 %v1050_v53  ;;  %v897_v54 = vpack.c.bf16 %v892_v52, %v892_v52  ;;  %2665 = vmatprep.mubr.msk.bf16.mxu0 %vm3017_vm1, %v3016_v5  ;;  %v2865_v52 = vld [vmem:[%s3663_s12 + $0x20] sm:$0xff]   ;;  %v2866_v53 = vld [vmem:[%s3663_s12 + $0x28] sm:$0xff]  }
 0x4b9   : > { %v2902_v55 = vpop.eup %2901  ;;  %2677 = vmatprep.subr.bf16.mxu0 %v3016_v5 }
 0x4ba   : > { %v894_v56 = vmul.f32 %v2902_v55, %v2894_v36  ;;  %2660 = vmatmul.mubr.msk.bf16.vlgmr.msra.gmra.mrb[16].mxu1 %vm647_vm2, %v897_v54  ;;  %v2867_v54 = vld [vmem:[%s3663_s12 + $0x30] sm:$0xff]   ;;  %v2868_v55 = vld [vmem:[%s3663_s12 + $0x38] sm:$0xff]  }
 0x4bb   : > { %2673 = vmatprep.mubr.msk.bf16.mxu1 %vm3017_vm1, %v3016_v5  ;;  %2670 = vmatpush3.bf16.msra.mxu1 %v2857_v62 }
 0x4bc   : > { %v898_v57 = vpack.c.bf16 %v894_v56, %v894_v56  ;;  %2671 = vmatprep.subr.bf16.mxu1 %v3016_v5 }
 0x4bf   : > { %2666 = vmatmul.mubr.msk.bf16.vlgmr.msra.gmra.mrb[12].mxu0 %vm647_vm2, %v898_v57  ;;  %2672 = vmatpush3.bf16.msra.mxu1 %v2858_v63 }
 0x4c0   : > { %2681 = vmatprep.mubr.msk.bf16.mxu0 %vm3017_vm1, %v3016_v5  ;;  %2685 = vmatprep.subr.bf16.mxu1 %v3016_v5 }
 0x4c1   : > { %2678 = vmatpush3.bf16.msra.mxu0 %v2859_v33 }
 0x4c2   : > { %2679 = vmatprep.subr.bf16.mxu0 %v3016_v5 }
 0x524   : > { %v942_v58 = vpop.f32.mrb[12].mxu1 }
 0x525   : > { %v2649_v59 = vpop.f32.mrb[13].mxu1 }
 0x526   : > { %v945_v60 = vpop.f32.mrb[14].mxu1 }
 0x527   : > { %v2650_v61 = vpop.f32.mrb[15].mxu1 }
 0x58a   : > { %v990_v1 = vpop.f32.mrb[8].mxu0 }
 0x58b   : > { %1093 = vrot.lane.b32.xlu0 %v990_v1, %s3676_s27  ;;  %v2655_v2 = vpop.f32.mrb[9].mxu0 }
 0x58c   : > { %v993_v3 = vpop.f32.mrb[10].mxu0 }
 0x58d   : > { %v2656_v4 = vpop.f32.mrb[11].mxu0  ;;  %v1038_v6 = vpop.f32.mrb[16].mxu1 }
 0x58e   : > { %1097 = vrot.lane.b32.xlu1 %v1038_v6, %s3675_s19  ;;  %v2661_v7 = vpop.f32.mrb[17].mxu1  ;;  %s3697_s19 = sld [smem:[#allocation16_spill]] }
 0x58f   : > { %v1041_v8 = vpop.f32.mrb[18].mxu1  ;;  %v2457_v7 = vld [vmem:[%s3664_s13] ss:$0 sm:$0xff] }
 0x590   : > { %v2662_v9 = vpop.f32.mrb[19].mxu1 }
 0x592   : > { %v1086_v10 = vpop.f32.mrb[12].mxu0 }
 0x593   : > { %1101 = vrot.lane.b32.xlu0 %v1086_v10, %s3674_s28  ;;  %v2667_v11 = vpop.f32.mrb[13].mxu0  ;;  %s3698_s28 = smov 120  }
 0x594   : > { %v1089_v12 = vpop.f32.mrb[14].mxu0  ;;  %v2452_v56 = vld [vmem:[%s3697_s19] ss:$0 sm:$0xff] }
 0x595   : > { %v2668_v13 = vpop.f32.mrb[15].mxu0 }
 0x5fd   : > { %v1094_v14 = vpop.permute.xlu0 %1093 }
 0x5fe   : > { %v1104_v16 = vsel %vm647_vm2, %v942_v58, %v1094_v14 }
 0x600   : > { %v1098_v15 = vpop.permute.xlu1 %1097 }
 0x601   : > { %v1106_v17 = vsel %vm1105_vm5, %v1104_v16, %v1098_v15 }
 0x605   : > { %v1102_v18 = vpop.permute.xlu0 %1101 }
 0x606   : > { %v1108_v19 = vsel %vm1107_vm6, %v1106_v17, %v1102_v18  ;;  %v2869_v17 = vld [vmem:[%s3691_s4 + $0x10] sm:$0xff]   ;;  %v2870_v18 = vld [vmem:[%s3691_s4 + $0x18] sm:$0xff]  }
 0x607   : > { %v1109_v20 = vpack.c.bf16 %v1108_v19, %v1108_v19 }
 0x609   : > { %2674 = vmatmul.mubr.msk.bf16.vlgmr.msra.gmra.mrb[20].mxu1 %vm532_vm0, %v1109_v20 }
 0x60a   : > { %2701 = vmatprep.mubr.msk.bf16.mxu1 %vm3017_vm1, %v3016_v5  ;;  %2686 = vmatpush3.bf16.msra.mxu1 %v2861_v48 }
 0x60b   : > { %2687 = vmatprep.subr.bf16.mxu1 %v3016_v5 }
 0x60e   : > { %2688 = vmatpush3.bf16.msra.mxu1 %v2862_v49 }
 0x60f   : > { %2689 = vmatprep.subr.bf16.mxu1 %v3016_v5 }
 0x612   : > { %2690 = vmatpush3.bf16.msra.mxu1 %v2863_v50 }
 0x613   : > { %2691 = vmatprep.subr.bf16.mxu1 %v3016_v5 }
 0x616   : > { %2692 = vmatpush3.bf16.msra.mxu1 %v2864_v51 }
 0x617   : > { %2693 = vmatprep.subr.bf16.mxu1 %v3016_v5 }
 0x61a   : > { %2694 = vmatpush3.bf16.msra.mxu1 %v2865_v52 }
 0x61b   : > { %2695 = vmatprep.subr.bf16.mxu1 %v3016_v5 }
 0x61e   : > { %2696 = vmatpush3.bf16.msra.mxu1 %v2866_v53 }
 0x61f   : > { %2697 = vmatprep.subr.bf16.mxu1 %v3016_v5 }
 0x622   : > { %2698 = vmatpush3.bf16.msra.mxu1 %v2867_v54 }
 0x623   : > { %2699 = vmatprep.subr.bf16.mxu1 %v3016_v5 }
 0x626   : > { %2700 = vmatpush3.bf16.msra.mxu1 %v2868_v55 }
 0x627   : > { %2731 = vmatprep.subr.bf16.mxu1 %v3016_v5 }
 0x6dc   : > { %v1170_v22 = vpop.f32.mrb[20].mxu1 }
 0x6dd   : > { %v1171_v23 = vadd.f32 %v2446_v21, %v1170_v22  ;;  %v2675_v24 = vpop.f32.mrb[21].mxu1 }
 0x6de   : > { %v1173_v25 = vpop.f32.mrb[22].mxu1 }
 0x6df   : > { %v3319_v26 = vadd.f32 %v1171_v23, %v3173_v0  ;;  %v2676_v27 = vpop.f32.mrb[23].mxu1  ;;  %v2860_v0 = vld [vmem:[%s3661_s10 + $0x8] sm:$0xff]  }
 0x6e0   : > { %2680 = vmatpush3.bf16.msra.mxu0 %v2860_v0 }
 0x6e1   : > { %v1179_v28 = vsel %vm532_vm0, %v3319_v26, 0.0  ;;  %v1183_v29 = vmul.f32 %v3319_v26, %v3319_v26  ;;  %2705 = vmatprep.subr.bf16.mxu0 %v3016_v5 }
 0x6e2   : > { %1180 = vadd.xlane.f32.xlu1 %v1179_v28  ;;  %v2468_v28 = vld [vmem:[%s3692_s2 + $0x1] ss:$0 sm:$0xff]  ;;  %s2267_s2 = sld [smem:[#allocation4 + %s3141_s11]] }
 0x6e3   : > { %v1184_v31 = vsel %vm532_vm0, %v1183_v29, 0.0 }
 0x6e4   : > { %1185 = vadd.xlane.f32.xlu0 %v1184_v31  ;;  %v2469_v31 = vld [vmem:[%s3693_s3 + $0x1] ss:$0 sm:$0xff] }
 0x6e8   : > { %s2268_s20 = scalar_lea.vmem [#allocation2], %s2267_s2 }
 0x76f   : > { %v1181_v34 = vpop.xlane.xlu1 %1180 }
 0x770   : > { %v1182_v36 = vmul.f32 0.03125, %v1181_v34 }
 0x771   : > { %v1186_v37 = vpop.xlane.xlu0 %1185 }
 0x772   : > { %v1188_v38 = vmul.f32 %v1182_v36, %v1182_v36  ;;  %v1187_v39 = vmul.f32 0.03125, %v1186_v37  ;;  %v1190_v42 = vsub.f32 %v3319_v26, %v1182_v36  ;;  %v2475_v36 = vld [vmem:[%s3694_s5 + $0x1] ss:$0 sm:$0xff] }
 0x774   : > { %v1189_v40 = vsub.f32 %v1187_v39, %v1188_v38 }
 0x776   : > { %v1191_v41 = vadd.f32 1e-05, %v1189_v40 }
 0x778   : > { %2903 = vrsqrt.f32 %v1191_v41 }
 0x782   : > { %v2904_v43 = vpop.eup %2903 }
 0x783   : > { %v1193_v44 = vmul.f32 %v2904_v43, %v1190_v42 }
 0x785   : > { %v1200_v30 = vmul.f32 %v2450_v32, %v1193_v44 }
 0x787   : > { %v1207_v45 = vadd.f32 %v2451_v35, %v1200_v30 }
 0x789   : > { %v1208_v46 = vpack.c.bf16 %v1207_v45, %v1207_v45 }
 0x78b   : > { %2682 = vmatmul.mubr.msk.bf16.vlgmr.msra.gmra.mrb[16].mxu0 %vm532_vm0, %v1208_v46 }
 0x78c   : > { %2709 = vmatprep.mubr.msk.bf16.mxu0 %vm3017_vm1, %v3016_v5  ;;  %2706 = vmatpush3.bf16.msra.mxu0 %v2869_v17 }
 0x78d   : > { %2707 = vmatprep.subr.bf16.mxu0 %v3016_v5 }
 0x790   : > { %2708 = vmatpush3.bf16.msra.mxu0 %v2870_v18 }
 0x791   : > { %2713 = vmatprep.subr.bf16.mxu0 %v3016_v5 }
 0x85e   : > { %v1269_v57 = vpop.f32.mrb[16].mxu0 }
 0x85f   : > { %v1270_v58 = vadd.f32 %v2452_v56, %v1269_v57  ;;  %v2683_v59 = vpop.f32.mrb[17].mxu0 }
 0x860   : > { %v1272_v60 = vpop.f32.mrb[18].mxu0 }
 0x861   : > { %v2456_v61 = vmul.f32 -1.702, %v1270_v58  ;;  %v2684_v62 = vpop.f32.mrb[19].mxu0 }
 0x863   : > { %v1277_v63 = vmul.f32 1.442695, %v2456_v61 }
 0x865   : > { %2905 = vpow2.f32 %v1277_v63 }
 0x86f   : > { %v2906_v1 = vpop.eup %2905 }
 0x870   : > { %v1279_v2 = vadd.f32 1.0, %v2906_v1 }
 0x872   : > { %2907 = vrcp.f32 %v1279_v2 }
 0x87c   : > { %v2908_v3 = vpop.eup %2907 }
 0x87d   : > { %v1282_v4 = vmul.f32 %v2908_v3, %v1270_v58 }
 0x87f   : > { %v1283_v6 = vpack.c.bf16 %v1282_v4, %v1282_v4 }
 0x881   : > { %2702 = vmatmul.mubr.bf16.vlgmr.msra.gmra.mrb[24].mxu1 %v1283_v6 }
 0x882   : > { %2733 = vmatprep.mubr.msk.bf16.mxu1 %vm3017_vm1, %v3016_v5 }
 0x954   : > { %v1389_v8 = vpop.f32.mrb[24].mxu1 }
 0x955   : > { %v1390_v9 = vadd.f32 %v2457_v7, %v1389_v8  ;;  %v2703_v10 = vpop.f32.mrb[25].mxu1 }
 0x956   : > { %v1392_v11 = vpop.f32.mrb[26].mxu1 }
 0x957   : > { %v3385_v12 = vadd.f32 %v1390_v9, %v3319_v26  ;;  %v2704_v13 = vpop.f32.mrb[27].mxu1 }
 0x959   : > { %v1400_v14 = vsel %vm532_vm0, %v3385_v12, 0.0  ;;  %v1404_v15 = vmul.f32 %v3385_v12, %v3385_v12 }
 0x95a   : > { %1401 = vadd.xlane.f32.xlu0 %v1400_v14 }
 0x95b   : > { %v1405_v16 = vsel %vm532_vm0, %v1404_v15, 0.0 }
 0x95c   : > { %1406 = vadd.xlane.f32.xlu1 %v1405_v16 }
 0x9e7   : > { %v1402_v19 = vpop.xlane.xlu0 %1401 }
 0x9e8   : > { %v1403_v20 = vmul.f32 0.03125, %v1402_v19 }
 0x9e9   : > { %v1407_v21 = vpop.xlane.xlu1 %1406 }
 0x9ea   : > { %v1409_v22 = vmul.f32 %v1403_v20, %v1403_v20  ;;  %v1408_v23 = vmul.f32 0.03125, %v1407_v21  ;;  %v1411_v26 = vsub.f32 %v3385_v12, %v1403_v20 }
 0x9ec   : > { %v1410_v24 = vsub.f32 %v1408_v23, %v1409_v22 }
 0x9ee   : > { %v1412_v25 = vadd.f32 1e-05, %v1410_v24 }
 0x9f0   : > { %2909 = vrsqrt.f32 %v1412_v25 }
 0x9fa   : > { %v2910_v27 = vpop.eup %2909 }
 0x9fb   : > { %v1414_v29 = vmul.f32 %v2910_v27, %v1411_v26 }
 0x9fd   : > { %v1421_v33 = vmul.f32 %v2468_v28, %v1414_v29 }
 0x9ff   : > { %v1428_v0 = vadd.f32 %v2469_v31, %v1421_v33 }
 0xa01   : > { %v1429_v34 = vpack.c.bf16 %v1428_v0, %v1428_v0 }
 0xa03   : > { %2710 = vmatmul.mubr.msk.bf16.vlgmr.msra.gmra.mrb[20].mxu0 %vm532_vm0, %v1429_v34 }
 0xa04   : > { %2715 = vmatprep.mubr.msk.bf16.mxu0 %vm3017_vm1, %v3016_v5 }
 0xad6   : > { %v1492_v37 = vpop.f32.mrb[20].mxu0 }
 0xad7   : > { %v1493_v38 = vadd.f32 %v2475_v36, %v1492_v37  ;;  %v2711_v39 = vpop.f32.mrb[21].mxu0 }
 0xad8   : > { %v1495_v40 = vpop.f32.mrb[22].mxu0 }
 0xad9   : > { %1502 = vrot.lane.b32.xlu1 %v1493_v38, %s3020_s22  ;;  %1499 = vrot.lane.b32.xlu0 %v1493_v38, %s3698_s28  ;;  %v2712_v41 = vpop.f32.mrb[23].mxu0  ;;  %v3415_v42 = vpack.c.bf16 %v1493_v38, %v1493_v38  ;;  %s3701_s22 = smov 64   ;;  %s2539_s28 = sshll.u32 %s3141_s11, 4 }
 0xada   : > { %s3608_s2 = scalar_lea.hbm %s3668_s17, %s2539_s28  ;;  %s3026_s11 = smov [#allocation5]  }
 0xadb   : > { %s2953_s4 = sshll.u32 %s3026_s11, 4  ;;  %s2954_s4 = int_to_ptr.vmem [resolvable:$false] %s2953_s4 }
 0xadc   : > { %s2955_s5 = scalar_lea.vmem %s2954_s4, 32 }
 0xadd   : > { %1505 = vrot.lane.b32.xlu1 %v1493_v38, %s3699_s26  ;;  %1513 = vrot.lane.b32.xlu0 %v3415_v42, %s3700_s25  ;;  %s3702_s26 = smov 8  }
 0xb4b   : > { %v1503_v43 = vpop.permute.xlu1 %1502  ;;  %v1500_v32 = vpop.permute.xlu0 %1499 }
 0xb4c   : > { %v3420_v44 = vpack.c.bf16 %v1503_v43, %v1503_v43  ;;  %v3422_v35 = vpack.c.bf16 %v1500_v32, %v1500_v32 }
 0xb4e   : > { %1562 = vrot.lane.b32.xlu1 %v3422_v35, %s3700_s25  ;;  %1611 = vrot.lane.b32.xlu0 %v3420_v44, %s3700_s25 }
 0xb4f   : > { %v1506_v30 = vpop.permute.xlu1 %1505  ;;  %v1514_v45 = vpop.permute.xlu0 %1513 }
 0xb50   : > { %v3428_v46 = vpack.c.bf16 %v1506_v30, %v1506_v30  ;;  %v1519_v48 = vsel %vm647_vm2, %v1514_v45, 0 }
 0xb51   : > { %2714 = vmatpush3.bf16.xpose.msra.mxu0 %v1519_v48 }
 0xb52   : > { %1660 = vrot.lane.b32.xlu1 %v3428_v46, %s3700_s25  ;;  %2719 = vmatprep.subr.bf16.mxu0 %v3016_v5  ;;  %s3703_s25 = smov 16  }
 0xb58   : > { %2716 = vmatmul.mubr.msk.bf16.vlgmr.msra.gmra.mrb[24].mxu0 %vm647_vm2, %v3415_v42 }
 0xb59   : > { %2721 = vmatprep.mubr.msk.bf16.mxu0 %vm3017_vm1, %v3016_v5 }
 0xbc0   : > { %v1563_v49 = vpop.permute.xlu1 %1562  ;;  %v1612_v53 = vpop.permute.xlu0 %1611 }
 0xbc1   : > { %v1568_v50 = vsel %vm647_vm2, %v1563_v49, 0  ;;  %v1617_v54 = vsel %vm647_vm2, %v1612_v53, 0 }
 0xbc2   : > { %2720 = vmatpush3.bf16.xpose.msra.mxu0 %v1568_v50 }
 0xbc3   : > { %2725 = vmatprep.subr.bf16.mxu0 %v3016_v5 }
 0xbc4   : > { %v1661_v51 = vpop.permute.xlu1 %1660 }
 0xbc5   : > { %v1666_v52 = vsel %vm647_vm2, %v1661_v51, 0 }
 0xbc6   : > { %2732 = vmatpush3.bf16.xpose.msra.mxu1 %v1666_v52 }
 0xbc7   : > { %2743 = vmatprep.subr.bf16.mxu1 %v3016_v5 }
 0xbc9   : > { %2722 = vmatmul.mubr.msk.bf16.vlgmr.msra.gmra.mrb[28].mxu0 %vm647_vm2, %v3422_v35 }
 0xbca   : > { %2726 = vmatpush3.bf16.xpose.msra.mxu0 %v1617_v54  ;;  %2727 = vmatprep.mubr.msk.bf16.mxu0 %vm3017_vm1, %v3016_v5 }
 0xbcb   : > { %2737 = vmatprep.subr.bf16.mxu0 %v3016_v5 }
 0xbcd   : > { %2734 = vmatmul.mubr.msk.bf16.vlgmr.msra.gmra.mrb[28].mxu1 %vm647_vm2, %v3428_v46 }
 0xbce   : > { %2745 = vmatprep.mubr.msk.bf16.mxu1 %vm3017_vm1, %v3016_v5 }
 0xbd1   : > { %2728 = vmatmul.mubr.msk.bf16.vlgmr.msra.gmra.mrb[32].mxu0 %vm647_vm2, %v3420_v44 }
 0xbd2   : > { %2739 = vmatprep.mubr.msk.bf16.mxu0 %vm3017_vm1, %v3016_v5 }
 0xc2b   : > { %v1555_v55 = vpop.f32.mrb[24].mxu0 }
 0xc2c   : > { %v1708_v56 = vmul.f32 0.35355338, %v1555_v55  ;;  %v2717_v57 = vpop.f32.mrb[25].mxu0 }
 0xc2d   : > { %v1558_v58 = vpop.f32.mrb[26].mxu0 }
 0xc2e   : > { %v2718_v59 = vpop.f32.mrb[27].mxu0  ;;  %v1712_v60 = vsel %vm3250_vm3, %v1708_v56, -1e+30 }
 0xc2f   : > { %v1716_v61 = vsel %vm647_vm2, %v1712_v60, -inf }
 0xc30   : > { %1717 = vmax.xlane.f32.xlu0 %v1716_v61 }
 0xc9c   : > { %v1604_v62 = vpop.f32.mrb[28].mxu0 }
 0xc9d   : > { %v1709_v63 = vmul.f32 0.35355338, %v1604_v62  ;;  %v2723_v1 = vpop.f32.mrb[29].mxu0 }
 0xc9e   : > { %v1607_v2 = vpop.f32.mrb[30].mxu0 }
 0xc9f   : > { %v2724_v3 = vpop.f32.mrb[31].mxu0  ;;  %v1713_v4 = vsel %vm3250_vm3, %v1709_v63, -1e+30 }
 0xca0   : > { %v1702_v6 = vpop.f32.mrb[28].mxu1  ;;  %v1719_v7 = vsel %vm647_vm2, %v1713_v4, -inf }
 0xca1   : > { %1720 = vmax.xlane.f32.xlu1 %v1719_v7  ;;  %v2735_v8 = vpop.f32.mrb[29].mxu1  ;;  %v1711_v13 = vmul.f32 0.35355338, %v1702_v6  ;;  %v2871_v7 = vld [vmem:[%s3657_s6 + $0x10] sm:$0xff]  }
 0xca2   : > { %v1705_v9 = vpop.f32.mrb[30].mxu1  ;;  %v2872_v8 = vld [vmem:[%s3657_s6 + $0x18] sm:$0xff]  }
 0xca3   : > { %v2736_v10 = vpop.f32.mrb[31].mxu1  ;;  %v1715_v20 = vsel %vm3250_vm3, %v1711_v13, -1e+30 }
 0xca4   : > { %v1653_v11 = vpop.f32.mrb[32].mxu0  ;;  %v1725_v21 = vsel %vm647_vm2, %v1715_v20, -inf }
 0xca5   : > { %v1710_v14 = vmul.f32 0.35355338, %v1653_v11  ;;  %v2729_v15 = vpop.f32.mrb[33].mxu0 }
 0xca6   : > { %v1656_v16 = vpop.f32.mrb[34].mxu0 }
 0xca7   : > { %v2730_v17 = vpop.f32.mrb[35].mxu0  ;;  %v1714_v18 = vsel %vm3250_vm3, %v1710_v14, -1e+30 }
 0xca8   : > { %v1722_v19 = vsel %vm647_vm2, %v1714_v18, -inf }
 0xca9   : > { %1723 = vmax.xlane.f32.xlu0 %v1722_v19 }
 0xcad   : > { %1726 = vmax.xlane.f32.xlu0 %v1725_v21 }
 0xcb2   : > { %1764 = vrot.lane.b32.xlu1 %v3415_v42, %s3701_s22 }
 0xcbd   : > { %v1718_v22 = vpop.xlane.xlu0 %1717 }
 0xcbe   : > { %v1728_v23 = vsub.f32 %v1712_v60, %v1718_v22 }
 0xcc0   : > { %v1732_v24 = vmul.f32 1.442695, %v1728_v23 }
 0xcc2   : > { %2911 = vpow2.f32 %v1732_v24 }
 0xccc   : > { %v2912_v25 = vpop.eup %2911 }
 0xccd   : > { %v1740_v26 = vsel %vm647_vm2, %v2912_v25, 0.0 }
 0xcd6   : > { %1741 = vadd.xlane.f32.xlu1 %v1740_v26 }
 0xce7   : > { %1860 = vrot.lane.b32.xlu1 %v3420_v44, %s3701_s22 }
 0xd2e   : > { %v1721_v27 = vpop.xlane.xlu1 %1720 }
 0xd2f   : > { %v1729_v47 = vsub.f32 %v1713_v4, %v1721_v27 }
 0xd31   : > { %v1734_v28 = vmul.f32 1.442695, %v1729_v47 }
 0xd32   : > { %v1765_v29 = vpop.permute.xlu1 %1764 }
 0xd33   : > { %2913 = vpow2.f32 %v1734_v28  ;;  %v1770_v31 = vsel %vm904_vm4, %v1765_v29, 0  ;;  %v2492_v28 = vld [vmem:[%s3658_s7 + $0x1] ss:$0 sm:$0xff] }
 0xd34   : > { %2738 = vmatpush3.bf16.msra.mxu0 %v1770_v31 }
 0xd35   : > { %2749 = vmatprep.subr.bf16.mxu0 %v3016_v5 }
 0xd36   : > { %v1724_v33 = vpop.xlane.xlu0 %1723 }
 0xd37   : > { %v1730_v0 = vsub.f32 %v1714_v18, %v1724_v33 }
 0xd39   : > { %v1736_v34 = vmul.f32 1.442695, %v1730_v0 }
 0xd3a   : > { %v1727_v36 = vpop.xlane.xlu0 %1726 }
 0xd3b   : > { %2915 = vpow2.f32 %v1736_v34  ;;  %v1731_v37 = vsub.f32 %v1715_v20, %v1727_v36 }
 0xd3d   : > { %v2914_v38 = vpop.eup %2913  ;;  %v1738_v39 = vmul.f32 1.442695, %v1731_v37 }
 0xd3e   : > { %v1743_v40 = vsel %vm647_vm2, %v2914_v38, 0.0 }
 0xd3f   : > { %2917 = vpow2.f32 %v1738_v39  ;;  %1744 = vadd.xlane.f32.xlu0 %v1743_v40  ;;  %v2873_v40 = vld [vmem:[%s3661_s10 + $0x10] sm:$0xff]  }
 0xd45   : > { %v2916_v41 = vpop.eup %2915 }
 0xd46   : > { %v1746_v42 = vsel %vm647_vm2, %v2916_v41, 0.0 }
 0xd47   : > { %1747 = vadd.xlane.f32.xlu1 %v1746_v42 }
 0xd49   : > { %v2918_v43 = vpop.eup %2917 }
 0xd4a   : > { %v1749_v32 = vsel %vm647_vm2, %v2918_v43, 0.0 }
 0xd4b   : > { %1750 = vadd.xlane.f32.xlu0 %v1749_v32 }
 0xd58   : > { %1908 = vrot.lane.b32.xlu1 %v3428_v46, %s3701_s22 }
 0xd61   : > { %1812 = vrot.lane.b32.xlu0 %v3422_v35, %s3701_s22  ;;  %s3704_s22 = smov 24  }
 0xd63   : > { %v1742_v44 = vpop.xlane.xlu1 %1741 }
 0xd64   : > { %2919 = vrcp.f32 %v1742_v44 }
 0xd67   : > { %v1861_v48 = vpop.permute.xlu1 %1860 }
 0xd68   : > { %v1866_v50 = vsel %vm904_vm4, %v1861_v48, 0 }
 0xd6e   : > { %v2920_v30 = vpop.eup %2919 }
 0xd6f   : > { %v1753_v45 = vmul.f32 %v2920_v30, %v2912_v25 }
 0xd71   : > { %v1760_v49 = vpack.c.bf16 %v1753_v45, %v1753_v45 }
 0xd73   : > { %2740 = vmatmul.mubr.msk.bf16.vlgmr.msra.gmra.mrb[36].mxu0 %vm647_vm2, %v1760_v49 }
 0xd74   : > { %2750 = vmatpush3.bf16.msra.mxu0 %v1866_v50  ;;  %2751 = vmatprep.mubr.msk.bf16.mxu0 %vm3017_vm1, %v3016_v5  ;;  %v2498_v50 = vld [vmem:[%s3659_s8 + $0x1] ss:$0 sm:$0xff] }
 0xd75   : > { %2761 = vmatprep.subr.bf16.mxu0 %v3016_v5 }
 0xdcc   : > { %v1745_v46 = vpop.xlane.xlu0 %1744 }
 0xdcd   : > { %2921 = vrcp.f32 %v1745_v46 }
 0xdd4   : > { %v1748_v51 = vpop.xlane.xlu1 %1747 }
 0xdd5   : > { %2923 = vrcp.f32 %v1748_v51  ;;  %v2499_v51 = vld [vmem:[%s3660_s9 + $0x1] ss:$0 sm:$0xff] }
 0xdd7   : > { %v2922_v35 = vpop.eup %2921 }
 0xdd8   : > { %v1751_v52 = vpop.xlane.xlu0 %1750  ;;  %v1755_v53 = vmul.f32 %v2922_v35, %v2914_v38  ;;  %v1909_v56 = vpop.permute.xlu1 %1908 }
 0xdd9   : > { %2925 = vrcp.f32 %v1751_v52  ;;  %v1914_v60 = vsel %vm904_vm4, %v1909_v56, 0  ;;  %v2877_v56 = vld [vmem:[%s3663_s12 + $0x50] sm:$0xff]  }
 0xdda   : > { %v1761_v58 = vpack.c.bf16 %v1755_v53, %v1755_v53 }
 0xddc   : > { %v1813_v54 = vpop.permute.xlu0 %1812 }
 0xddd   : > { %v1818_v55 = vsel %vm904_vm4, %v1813_v54, 0  ;;  %v2875_v54 = vld [vmem:[%s3663_s12 + $0x40] sm:$0xff]  }
 0xdde   : > { %2744 = vmatpush3.bf16.msra.mxu1 %v1818_v55  ;;  %v2876_v55 = vld [vmem:[%s3663_s12 + $0x48] sm:$0xff]  }
 0xddf   : > { %v2924_v57 = vpop.eup %2923  ;;  %2755 = vmatprep.subr.bf16.mxu1 %v3016_v5 }
 0xde0   : > { %v1757_v59 = vmul.f32 %v2924_v57, %v2916_v41  ;;  %v2878_v57 = vld [vmem:[%s3663_s12 + $0x58] sm:$0xff]  }
 0xde1   : > { %2746 = vmatmul.mubr.msk.bf16.vlgmr.msra.gmra.mrb[32].mxu1 %vm647_vm2, %v1761_v58  ;;  %v2879_v58 = vld [vmem:[%s3663_s12 + $0x60] sm:$0xff]  }
 0xde2   : > { %2756 = vmatpush3.bf16.msra.mxu1 %v1914_v60  ;;  %v1762_v61 = vpack.c.bf16 %v1757_v59, %v1757_v59  ;;  %2757 = vmatprep.mubr.msk.bf16.mxu1 %vm3017_vm1, %v3016_v5  ;;  %v2880_v59 = vld [vmem:[%s3663_s12 + $0x68] sm:$0xff]   ;;  %v2881_v60 = vld [vmem:[%s3663_s12 + $0x70] sm:$0xff]  }
 0xde3   : > { %v2926_v62 = vpop.eup %2925  ;;  %2769 = vmatprep.subr.bf16.mxu1 %v3016_v5 }
 0xde4   : > { %v1759_v63 = vmul.f32 %v2926_v62, %v2918_v43  ;;  %2752 = vmatmul.mubr.msk.bf16.vlgmr.msra.gmra.mrb[40].mxu0 %vm647_vm2, %v1762_v61  ;;  %v2882_v61 = vld [vmem:[%s3663_s12 + $0x78] sm:$0xff]   ;;  %v2505_v62 = vld [vmem:[%s3697_s19 + $0x1] ss:$0 sm:$0xff] }
 0xde5   : > { %2765 = vmatprep.mubr.msk.bf16.mxu0 %vm3017_vm1, %v3016_v5  ;;  %2762 = vmatpush3.bf16.msra.mxu0 %v2871_v7 }
 0xde6   : > { %v1763_v1 = vpack.c.bf16 %v1759_v63, %v1759_v63  ;;  %2763 = vmatprep.subr.bf16.mxu0 %v3016_v5 }
 0xde9   : > { %2758 = vmatmul.mubr.msk.bf16.vlgmr.msra.gmra.mrb[36].mxu1 %vm647_vm2, %v1763_v1  ;;  %2764 = vmatpush3.bf16.msra.mxu0 %v2872_v8 }
 0xdea   : > { %2773 = vmatprep.mubr.msk.bf16.mxu1 %vm3017_vm1, %v3016_v5  ;;  %2777 = vmatprep.subr.bf16.mxu0 %v3016_v5 }
 0xdeb   : > { %2770 = vmatpush3.bf16.msra.mxu1 %v2873_v40 }
 0xdec   : > { %2771 = vmatprep.subr.bf16.mxu1 %v3016_v5 }
 0xe46   : > { %v1806_v2 = vpop.f32.mrb[36].mxu0 }
 0xe47   : > { %v2741_v3 = vpop.f32.mrb[37].mxu0 }
 0xe48   : > { %v1809_v4 = vpop.f32.mrb[38].mxu0 }
 0xe49   : > { %v2742_v6 = vpop.f32.mrb[39].mxu0 }
 0xeb4   : > { %v1854_v9 = vpop.f32.mrb[32].mxu1 }
 0xeb5   : > { %1957 = vrot.lane.b32.xlu0 %v1854_v9, %s3702_s26  ;;  %v2747_v10 = vpop.f32.mrb[33].mxu1  ;;  %s518_s26 = scalar_lea.vmem [#allocation5], %s517_s21 }
 0xeb6   : > { %v1857_v11 = vpop.f32.mrb[34].mxu1 }
 0xeb7   : > { %v2748_v13 = vpop.f32.mrb[35].mxu1  ;;  %v1902_v14 = vpop.f32.mrb[40].mxu0 }
 0xeb8   : > { %1961 = vrot.lane.b32.xlu1 %v1902_v14, %s3703_s25  ;;  %v2753_v15 = vpop.f32.mrb[41].mxu0  ;;  %v2527_v14 = vld [vmem:[%s3664_s13 + $0x1] ss:$0 sm:$0xff]  ;;  %s2371_s25 = sshll.u32 %s518_s26, 4  ;;  %s3610_s25 = int_to_ptr.vmem [resolvable:$true] %s2371_s25 }
 0xeb9   : > { %v1905_v16 = vpop.f32.mrb[42].mxu0  ;;  %s2949_s3 = scalar_lea.vmem %s3610_s25, 16  ;;  %p2956_p5 = scmp.lt.s32.totalorder %s3610_s25, %s2954_s4 }
 0xeba   : > { %v2754_v17 = vpop.f32.mrb[43].mxu0  ;;  %p2950_p2 = scmp.ne.s32.totalorder %s3610_s25, %s2949_s3  ;;  %p2957_p6 = scmp.lt.s32.totalorder %s2955_s5, %s2949_s3 }
 0xebc   : > { %v1950_v18 = vpop.f32.mrb[36].mxu1  ;;  %p2951_p3 = pnand %p2950_p2, %p3158_p10  ;;  %p2958_p7 = por %p2957_p6, %p2956_p5 }
 0xebd   : > { %1965 = vrot.lane.b32.xlu0 %v1950_v18, %s3704_s22  ;;  %v2759_v19 = vpop.f32.mrb[37].mxu1 }
 0xebe   : > { %v1953_v20 = vpop.f32.mrb[38].mxu1  ;;  %p2952_p4 = pneg %p2951_p3 }
 0xebf   : > { %v2760_v21 = vpop.f32.mrb[39].mxu1 }
 0xec0   : > { %p2959_p8 = pnand %p2958_p7, %p2952_p4 }
 0xf27   : > { %v1958_v22 = vpop.permute.xlu0 %1957 }
 0xf28   : > { %v1968_v24 = vsel %vm647_vm2, %v1806_v2, %v1958_v22 }
 0xf2a   : > { %v1962_v23 = vpop.permute.xlu1 %1961 }
 0xf2b   : > { %v1969_v25 = vsel %vm1105_vm5, %v1968_v24, %v1962_v23 }
 0xf2f   : > { %v1966_v26 = vpop.permute.xlu0 %1965 }
 0xf30   : > { %v1970_v27 = vsel %vm1107_vm6, %v1969_v25, %v1966_v26  ;;  %v2883_v25 = vld [vmem:[%s3667_s16] sm:$0xff]   ;;  %v2884_v26 = vld [vmem:[%s3667_s16 + $0x8] sm:$0xff]  }
 0xf31   : > { %v1971_v47 = vpack.c.bf16 %v1970_v27, %v1970_v27 }
 0xf33   : > { %2766 = vmatmul.mubr.msk.bf16.vlgmr.msra.gmra.mrb[44].mxu0 %vm532_vm0, %v1971_v47 }
 0xf34   : > { %2793 = vmatprep.mubr.msk.bf16.mxu0 %vm3017_vm1, %v3016_v5  ;;  %2778 = vmatpush3.bf16.msra.mxu0 %v2875_v54 }
 0xf35   : > { %2779 = vmatprep.subr.bf16.mxu0 %v3016_v5 }
 0xf38   : > { %2780 = vmatpush3.bf16.msra.mxu0 %v2876_v55 }
 0xf39   : > { %2781 = vmatprep.subr.bf16.mxu0 %v3016_v5 }
 0xf3c   : > { %2782 = vmatpush3.bf16.msra.mxu0 %v2877_v56 }
 0xf3d   : > { %2783 = vmatprep.subr.bf16.mxu0 %v3016_v5 }
 0xf40   : > { %2784 = vmatpush3.bf16.msra.mxu0 %v2878_v57 }
 0xf41   : > { %2785 = vmatprep.subr.bf16.mxu0 %v3016_v5 }
 0xf44   : > { %2786 = vmatpush3.bf16.msra.mxu0 %v2879_v58 }
 0xf45   : > { %2787 = vmatprep.subr.bf16.mxu0 %v3016_v5 }
 0xf48   : > { %2788 = vmatpush3.bf16.msra.mxu0 %v2880_v59 }
 0xf49   : > { %2789 = vmatprep.subr.bf16.mxu0 %v3016_v5 }
 0xf4c   : > { %2790 = vmatpush3.bf16.msra.mxu0 %v2881_v60 }
 0xf4d   : > { %2791 = vmatprep.subr.bf16.mxu0 %v3016_v5 }
 0xf50   : > { %2792 = vmatpush3.bf16.msra.mxu0 %v2882_v61 }
0x1006   : > { %v2034_v29 = vpop.f32.mrb[44].mxu0 }
0x1007   : > { %v2035_v31 = vadd.f32 %v2492_v28, %v2034_v29  ;;  %v2767_v33 = vpop.f32.mrb[45].mxu0 }
0x1008   : > { %v2037_v0 = vpop.f32.mrb[46].mxu0 }
0x1009   : > { %v3521_v34 = vadd.f32 %v2035_v31, %v3385_v12  ;;  %v2768_v36 = vpop.f32.mrb[47].mxu0  ;;  %v2874_v12 = vld [vmem:[%s3661_s10 + $0x18] sm:$0xff]  }
0x100a   : > { %2772 = vmatpush3.bf16.msra.mxu1 %v2874_v12 }
0x100b   : > { %v2045_v37 = vsel %vm532_vm0, %v3521_v34, 0.0  ;;  %v2049_v38 = vmul.f32 %v3521_v34, %v3521_v34  ;;  %2797 = vmatprep.subr.bf16.mxu1 %v3016_v5 }
0x100c   : > { %2046 = vadd.xlane.f32.xlu1 %v2045_v37  ;;  %v2270_v37 = vld [vmem:[%s3665_s14] sm:$0x1] }
0x100d   : > { %v2050_v39 = vsel %vm532_vm0, %v2049_v38, 0.0 }
0x100e   : > { %2051 = vadd.xlane.f32.xlu0 %v2050_v39 }
0x1099   : > { %v2047_v41 = vpop.xlane.xlu1 %2046 }
0x109a   : > { %v2048_v42 = vmul.f32 0.03125, %v2047_v41 }
0x109b   : > { %v2052_v43 = vpop.xlane.xlu0 %2051 }
0x109c   : > { %v2054_v32 = vmul.f32 %v2048_v42, %v2048_v42  ;;  %v2053_v44 = vmul.f32 0.03125, %v2052_v43  ;;  %v2056_v48 = vsub.f32 %v3521_v34, %v2048_v42 }
0x109e   : > { %v2055_v30 = vsub.f32 %v2053_v44, %v2054_v32 }
0x10a0   : > { %v2057_v45 = vadd.f32 1e-05, %v2055_v30 }
0x10a2   : > { %2927 = vrsqrt.f32 %v2057_v45 }
0x10ac   : > { %v2928_v49 = vpop.eup %2927 }
0x10ad   : > { %v2059_v46 = vmul.f32 %v2928_v49, %v2056_v48 }
0x10af   : > { %v2066_v35 = vmul.f32 %v2498_v50, %v2059_v46 }
0x10b1   : > { %v2073_v52 = vadd.f32 %v2499_v51, %v2066_v35 }
0x10b3   : > { %v2074_v53 = vpack.c.bf16 %v2073_v52, %v2073_v52 }
0x10b5   : > { %2774 = vmatmul.mubr.msk.bf16.vlgmr.msra.gmra.mrb[40].mxu1 %vm532_vm0, %v2074_v53 }
0x10b6   : > { %2801 = vmatprep.mubr.msk.bf16.mxu1 %vm3017_vm1, %v3016_v5  ;;  %2798 = vmatpush3.bf16.msra.mxu1 %v2883_v25 }
0x10b7   : > { %2799 = vmatprep.subr.bf16.mxu1 %v3016_v5  ;;  %v2271_v5 = vld [vmem:[%s3666_s15] sm:$0x1] }
0x10ba   : > { %2800 = vmatpush3.bf16.msra.mxu1 %v2884_v26 }
0x1188   : > { %v2137_v63 = vpop.f32.mrb[40].mxu1 }
0x1189   : > { %v2138_v1 = vadd.f32 %v2505_v62, %v2137_v63  ;;  %v2775_v2 = vpop.f32.mrb[41].mxu1 }
0x118a   : > { %v2140_v3 = vpop.f32.mrb[42].mxu1 }
0x118b   : > { %v2509_v4 = vmul.f32 -1.702, %v2138_v1  ;;  %v2776_v6 = vpop.f32.mrb[43].mxu1 }
0x118d   : > { %v2145_v7 = vmul.f32 1.442695, %v2509_v4 }
0x118f   : > { %2929 = vpow2.f32 %v2145_v7 }
0x1199   : > { %v2930_v8 = vpop.eup %2929 }
0x119a   : > { %v2147_v9 = vadd.f32 1.0, %v2930_v8 }
0x119c   : > { %2931 = vrcp.f32 %v2147_v9 }
0x11a6   : > { %v2932_v10 = vpop.eup %2931 }
0x11a7   : > { %v2150_v11 = vmul.f32 %v2932_v10, %v2138_v1 }
0x11a9   : > { %v2151_v13 = vpack.c.bf16 %v2150_v11, %v2150_v11 }
0x11ab   : > { %2794 = vmatmul.mubr.bf16.vlgmr.msra.gmra.mrb[48].mxu0 %v2151_v13 }
0x127e   : > { %v2259_v15 = vpop.f32.mrb[48].mxu0 }
0x127f   : > { %v2260_v16 = vadd.f32 %v2527_v14, %v2259_v15  ;;  %v2795_v17 = vpop.f32.mrb[49].mxu0 }
0x1280   : > { %v2262_v18 = vpop.f32.mrb[50].mxu0 }
0x1281   : > { %v2265_v19 = vadd.f32 %v2260_v16, %v3521_v34  ;;  %v2796_v20 = vpop.f32.mrb[51].mxu0 }
0x1283   : > { %2266 = vst.msk [vmem:[#allocation2] sm:$0xff] %vm532_vm0, %v2265_v19 }
0x128a   : > { %v2269_v21 = vld [vmem:[%s2268_s20] sm:$0x1]  ;;  %s2359_s20 = scalar_lea.sflag [#allocation6], %s517_s21 }
0x128b   : > { %v2273_v22 = vsel %vm2272_vm7, %v2269_v21, 0.0  ;;  %v2277_v23 = vmul.f32 %v2269_v21, %v2269_v21 }
0x128c   : > { %2274 = vadd.xlane.f32.xlu0 %v2273_v22 }
0x128d   : > { %v2278_v24 = vsel %vm2272_vm7, %v2277_v23, 0.0 }
0x128e   : > { %2279 = vadd.xlane.f32.xlu1 %v2278_v24 }
0x1319   : > { %v2275_v27 = vpop.xlane.xlu0 %2274 }
0x131a   : > { %v2276_v47 = vmul.f32 0.03125, %v2275_v27 }
0x131b   : > { %v2280_v28 = vpop.xlane.xlu1 %2279 }
0x131c   : > { %v2282_v29 = vmul.f32 %v2276_v47, %v2276_v47  ;;  %v2281_v31 = vmul.f32 0.03125, %v2280_v28  ;;  %v2284_v34 = vsub.f32 %v2269_v21, %v2276_v47 }
0x131e   : > { %v2283_v33 = vsub.f32 %v2281_v31, %v2282_v29 }
0x1320   : > { %v2285_v0 = vadd.f32 1e-05, %v2283_v33 }
0x1322   : > { %2933 = vrsqrt.f32 %v2285_v0 }
0x132c   : > { %v2934_v36 = vpop.eup %2933 }
0x132d   : > { %v2287_v38 = vmul.f32 %v2934_v36, %v2284_v34 }
0x132f   : > { %v2288_v39 = vmul.f32 %v2287_v38, %v2270_v37 }
0x1331   : > { %v2289_v40 = vadd.f32 %v2288_v39, %v2271_v5 }
0x1333   : > { %v2290_v12 = vpack.c.bf16 %v2289_v40, %v2289_v40 }
0x1335   : > { %2802 = vmatmul.mubr.msk.bf16.vlgmr.msra.gmra.mrb[44].mxu1 %vm532_vm0, %v2290_v12 }
0x1408   : > { %v2344_v41 = vpop.f32.mrb[44].mxu1 }
0x1409   : > { %v2350_v42 = vmul.f32 %v2344_v41, %v2344_v41  ;;  %v2803_v43 = vpop.f32.mrb[45].mxu1 }
0x140a   : > { %v2347_v32 = vpop.f32.mrb[46].mxu1 }
0x140b   : > { %v2804_v44 = vpop.f32.mrb[47].mxu1  ;;  %v2351_v30 = vsel %vm2272_vm7, %v2350_v42, 0.0 }
0x140c   : > { %2352 = vadd.xlane.f32.xlu0 %v2351_v30 }
0x1499   : > { %v2353_v45 = vpop.xlane.xlu0 %2352 }
0x149a   : > { %v2354_v48 = vadd.f32 1e-12, %v2353_v45 }
0x149c   : > { %2935 = vrsqrt.f32 %v2354_v48 }
0x14a6   : > { %v2936_v49 = vpop.eup %2935 }
0x14a7   : > { %v2356_v50 = vmul.f32 %v2936_v49, %v2344_v41 }
0x14a9   : > { %2357 = vst.msk [vmem:[%s518_s26] sm:$0x1] %vm2272_vm7, %v2356_v50 }
0x14aa   : > { %2962 = shalt.err (!%p2959_p8)
}
0x14ab   : > { %s2963_s21 = scalar_lea.hbm %s3608_s2, 16  ;;  %s2967_s22 = scalar_lea.hbm %s3668_s17, 32 }
0x14ac   : > { %p2964_p9 = scmp.ne.s32.totalorder %s3608_s2, %s2963_s21  ;;  %p2968_p0 = scmp.lt.u32.totalorder %s3608_s2, %s3668_s17 }
0x14ad   : > { %p2969_p1 = scmp.lt.u32.totalorder %s2967_s22, %s2963_s21  ;;  %p2971_p3 = scmp.lt.u32.totalorder %s2963_s21, %s3608_s2 }
0x14ae   : > { %p2965_p12 = pnand %p2964_p9, %p3158_p10 }
0x14af   : > { %p2970_p2 = por %p2969_p1, %p2968_p0 }
0x14b0   : > { %p2966_p13 = pneg %p2965_p12 }
0x14b1   : > { %p2972_p4 = por %p2971_p3, %p2970_p2 }
0x14b3   : > { %p2973_p5 = pnand %p2972_p4, %p2966_p13 }
0x14b5   : > { %2976 = shalt.err (!%p2973_p5)
}
0x14b6   : > { %2805 = dma.vmem_to_hbm [thread:$0]  (%p3158_p10), %s3610_s25, 16, %s3608_s2, %s2359_s20  }
0x14b7 PF: > { %p2811_p6 = scmp.ge.s32.totalorder %s3013_s18, 2  ;;  %s2383_s3 = sand.u32 1, %s3001_s29  }
0x14b8   : > { %s2384_s5 = scalar_lea.sflag [#allocation6], %s2383_s3 }
0x14b9   : > { %p2808_p7 = pnand %p2811_p6, %p3162_p11 }
0x14bb   : > { %2996 = dma.done.wait (!%p2808_p7), %s2384_s5, 16  }
0x14bc   : > { %2998 = vsyncadd (!%p2808_p7), %s2384_s5, 4294967280  ;;  %s3705_s11 = sld [smem:[#allocation9_spill]]  ;;  %p33_p8 = scmp.ge.s32.totalorder %s3145_s1, 4  }
0x14bd   : > { %s3706_s29 = smov %s3005_s0  ;;  %s3707_s0 = smov %s3009_s30 }
0x14be   : > { %s3709_s18 = smov %s3145_s1  ;;  %35 = sbr.rel (!%p33_p8) target bundleno = 25 (0x19), region = 132 }
0x14c2   : > { %s3708_s30 = smov %s3705_s11 }
0x14c5   :  { %2388 = vsyncpa [#allocation6], 1 }
0x14c6   :  { %2390 = vsyncpa [#allocation6 + $0x1], 1 }

</bundles_post_ra>
